<compile_context>
chip_gen: v7x
topology: tpu7x:2x2x1
jax: 0.10.0
libtpu: 0.0.40
codegen_flags: <defaults>
</compile_context>

<pallas_src>
import functools
import numpy as np

import jax
import jax.numpy as jnp
from jax.experimental import pallas as pl
from jax.experimental.pallas import tpu as pltpu


BRANCH_CHANNELS = (16, 32, 64)          # 'hr_tiny_feat16...' stand-in
FINAL_CONV_IN = sum(BRANCH_CHANNELS)    # 112
FINAL_CONV_OUT = 64

_ACT_DTYPE = jnp.bfloat16               # dtype of HBM intermediates / MXU operands
_TK2_CAP = 1024                         # cap on coarse-K tile of the fused upsample


def _round_up(x, m):
    return ((x + m - 1) // m) * m


def _pick_m_tile(m_pad, cap=2048, min_tiles=1):
    """Largest multiple of 128 <= cap that divides m_pad with >= min_tiles tiles."""
    best, t = 128, 128
    while t <= min(cap, m_pad):
        if m_pad % t == 0 and (m_pad // t) >= min_tiles:
            best = t
        t += 128
    return best


# ----------------------------------------------------------------------------
# Kernel 1: coarse branch conv + ReLU, with the final-conv weights folded in
# (valid because trilinear interpolation is linear and channel-wise):
#   t[co, q] = sum_cb Wfold[co, cb] * relu( sum_ci WbT[cb, ci] x[ci, q] + b[cb] )
# ----------------------------------------------------------------------------
def _coarse_branch_kernel(x_ref, wbt_ref, bb_ref, wf_ref, o_ref):
    f = jnp.dot(wbt_ref[...], x_ref[...], preferred_element_type=jnp.float32)
    f = jnp.maximum(f + bb_ref[...], 0.0)
    t = jnp.dot(wf_ref[...], f, preferred_element_type=jnp.float32)
    o_ref[...] = t.astype(o_ref.dtype)


def coarse_branch_proj(x_cf, wb, bb, wf, *, tmc):
    """x_cf: (N, Cin, Mc) f32 (Mc a multiple of tmc, zero-padded);
    wb: (Cin, Cb); bb: (Cb,); wf: (Cout, Cb) -> (N, Cout, Mc) bf16."""
    n, cin, mc = x_cf.shape
    cb = wb.shape[1]
    cout = wf.shape[0]
    return pl.pallas_call(
        _coarse_branch_kernel,
        out_shape=jax.ShapeDtypeStruct((n, cout, mc), _ACT_DTYPE),
        grid_spec=pltpu.PrefetchScalarGridSpec(
            num_scalar_prefetch=0,
            grid=(n, mc // tmc),
            in_specs=[
                pl.BlockSpec((None, cin, tmc), lambda bi, mi: (bi, 0, mi)),
                pl.BlockSpec((cb, cin), lambda bi, mi: (0, 0)),
                pl.BlockSpec((cb, 1), lambda bi, mi: (0, 0)),
                pl.BlockSpec((cout, cb), lambda bi, mi: (0, 0)),
            ],
            out_specs=pl.BlockSpec((None, cout, tmc), lambda bi, mi: (bi, 0, mi)),
        ),
        compiler_params=pltpu.CompilerParams(
            dimension_semantics=("parallel", "parallel")),
    )(x_cf.astype(jnp.float32),
      wb.T.astype(jnp.float32),
      bb.reshape(cb, 1).astype(jnp.float32),
      wf.astype(jnp.float32))


# ----------------------------------------------------------------------------
# Kernel 2: fused final pass over the full-resolution volume.
#   out = W1f @ relu(Wb1^T x + b1)          (top branch + final conv, k == 0)
#       + t2 @ KT2 + t3 @ KT3               (trilinear upsample of the folded
#                                            coarse branches, tiled over k)
#       + b_final
# f32 VMEM accumulator with pl.when init/finalize (P3 pattern).
# ----------------------------------------------------------------------------
def _final_fused_kernel(x_ref, t2_ref, kt2_ref, t3_ref, kt3_ref,
                        wb1t_ref, bb1_ref, w1f_ref, bf_ref,
                        o_ref, acc_ref):
    k = pl.program_id(2)

    @pl.when(k == 0)
    def _():
        f1 = jnp.dot(wb1t_ref[...], x_ref[...],
                     preferred_element_type=jnp.float32)
        f1 = jnp.maximum(f1 + bb1_ref[...], 0.0)
        acc_ref[...] = (jnp.dot(w1f_ref[...], f1,
                                preferred_element_type=jnp.float32)
                        + bf_ref[...])

    acc_ref[...] += jnp.dot(t2_ref[...], kt2_ref[...],
                            preferred_element_type=jnp.float32)
    acc_ref[...] += jnp.dot(t3_ref[...], kt3_ref[...],
                            preferred_element_type=jnp.float32)

    @pl.when(k == pl.num_programs(2) - 1)
    def _():
        o_ref[...] = acc_ref[...].astype(o_ref.dtype)


def final_fused(x_cf, t2, kt2, t3, kt3, wb1, bb1, w1f, bf,
                *, tm, tk2, tk3, out_dtype):
    """x_cf: (N, Cin, m_pad) f32; t2/t3: (N, 64, m2_pad/m3_pad) bf16;
    kt2/kt3: (m2_pad, m_pad)/(m3_pad, m_pad) interp matrices."""
    n, cin, m_pad = x_cf.shape
    cout = w1f.shape[0]
    c1 = wb1.shape[1]
    nk = kt2.shape[0] // tk2
    return pl.pallas_call(
        _final_fused_kernel,
        out_shape=jax.ShapeDtypeStruct((n, cout, m_pad), out_dtype),
        grid_spec=pltpu.PrefetchScalarGridSpec(
            num_scalar_prefetch=0,
            grid=(n, m_pad // tm, nk),
            in_specs=[
                pl.BlockSpec((None, cin, tm), lambda bi, mi, ki: (bi, 0, mi)),
                pl.BlockSpec((None, cout, tk2), lambda bi, mi, ki: (bi, 0, ki)),
                pl.BlockSpec((tk2, tm), lambda bi, mi, ki: (ki, mi)),
                pl.BlockSpec((None, cout, tk3), lambda bi, mi, ki: (bi, 0, ki)),
                pl.BlockSpec((tk3, tm), lambda bi, mi, ki: (ki, mi)),
                pl.BlockSpec((c1, cin), lambda bi, mi, ki: (0, 0)),
                pl.BlockSpec((c1, 1), lambda bi, mi, ki: (0, 0)),
                pl.BlockSpec((cout, c1), lambda bi, mi, ki: (0, 0)),
                pl.BlockSpec((cout, 1), lambda bi, mi, ki: (0, 0)),
            ],
            out_specs=pl.BlockSpec((None, cout, tm),
                                   lambda bi, mi, ki: (bi, 0, mi)),
            scratch_shapes=[pltpu.VMEM((cout, tm), jnp.float32)],
        ),
        compiler_params=pltpu.CompilerParams(
            dimension_semantics=("parallel", "parallel", "arbitrary")),
    )(x_cf.astype(jnp.float32),
      t2.astype(_ACT_DTYPE), kt2.astype(_ACT_DTYPE),
      t3.astype(_ACT_DTYPE), kt3.astype(_ACT_DTYPE),
      wb1.T.astype(jnp.float32),
      bb1.reshape(c1, 1).astype(jnp.float32),
      w1f.astype(jnp.float32),
      bf.reshape(cout, 1).astype(jnp.float32))


# ----------------------------------------------------------------------------
# Precomputed trilinear-interpolation (align_corners=True) matrices
# ----------------------------------------------------------------------------
def _interp_matrix_np(out_size, in_size):
    """Linear interpolation matrix (align_corners=True), shape (out, in)."""
    mat = np.zeros((out_size, in_size), dtype=np.float64)
    if out_size == 1 or in_size == 1:
        mat[:, 0] = 1.0
        return mat
    scale = (in_size - 1) / (out_size - 1)
    src = np.arange(out_size, dtype=np.float64) * scale
    lo = np.minimum(np.floor(src).astype(np.int64), in_size - 1)
    hi = np.minimum(lo + 1, in_size - 1)
    frac = src - lo
    mat[np.arange(out_size), lo] += 1.0 - frac
    mat[np.arange(out_size), hi] += frac
    return mat


def _kron_np(out_dhw, in_dhw):
    md = _interp_matrix_np(out_dhw[0], in_dhw[0])
    mh = _interp_matrix_np(out_dhw[1], in_dhw[1])
    mw = _interp_matrix_np(out_dhw[2], in_dhw[2])
    return np.kron(md, np.kron(mh, mw)).astype(np.float32)   # (M_out, M_in)


def _kron_interp_T(out_dhw, in_dhw, rows_pad, cols_pad):
    """(M_D (x) M_H (x) M_W)^T, zero-padded to (rows_pad, cols_pad)."""
    k = _kron_np(out_dhw, in_dhw)                 # (M_out, M_in)
    kt = np.zeros((rows_pad, cols_pad), dtype=np.float32)
    kt[:k.shape[1], :k.shape[0]] = k.T
    return jnp.asarray(kt)


# ----------------------------------------------------------------------------
# Parameters (stand-in backbone branches + final fuse conv)
# ----------------------------------------------------------------------------
def init_params(cin, key):
    keys = jax.random.split(key, 2 * len(BRANCH_CHANNELS) + 2)
    params = {"branches": []}
    for i, c in enumerate(BRANCH_CHANNELS):
        w = jax.random.normal(keys[2 * i], (cin, c), jnp.float32) * 0.1
        b = jax.random.normal(keys[2 * i + 1], (c,), jnp.float32) * 0.01
        params["branches"].append((w, b))
    params["final_w"] = jax.random.normal(
        keys[-2], (FINAL_CONV_IN, FINAL_CONV_OUT), jnp.float32) * 0.05
    params["final_b"] = jax.random.normal(
        keys[-1], (FINAL_CONV_OUT,), jnp.float32) * 0.01
    return params


# ----------------------------------------------------------------------------
# HRNet3D.forward  (3D branch, final_fuse='conat_conv', no feat_transform)
# ----------------------------------------------------------------------------
def hrnet3d_forward(x_ncdhw, params, final_fuse="conat_conv",
                    out_dtype=jnp.float32):
    # TODO(synk): 'top' / Identity final_conv / 'hrnet2d' / feat_transform
    #             paths of the original module are not implemented.
    assert final_fuse == "conat_conv"

    n, cin, d, h, w = x_ncdhw.shape
    assert d % 4 == 0 and h % 4 == 0 and w % 4 == 0
    m = d * h * w
    m2 = (d // 2) * (h // 2) * (w // 2)
    m3 = (d // 4) * (h // 4) * (w // 4)

    m_pad = _round_up(m, 128)
    min_m_tiles = 2 if n == 1 else 1           # keep both v7x TCs busy when N==1
    tm = _pick_m_tile(m_pad, cap=2048, min_tiles=min_m_tiles)

    # coarse-K tiling of the fused upsample contraction (caps per-step VMEM).
    if m2 <= _TK2_CAP:
        tk2, nk = m2, 1
    else:
        tk2 = _TK2_CAP
        nk = -(-m2 // tk2)
    m2_pad = nk * tk2
    tk3 = m3 if nk == 1 else _TK2_CAP // 8     # m3 == m2 // 8 exactly
    m3_pad = nk * tk3

    # ---- weight split; the final-conv weights for the coarse branches are
    # ---- folded into the branch kernels (linearity of trilinear interp).
    c0, c1b, _ = BRANCH_CHANNELS
    (wb1, bb1), (wb2, bb2), (wb3, bb3) = params["branches"]
    wf = params["final_w"]                      # (112, 64)
    bf = params["final_b"]                      # (64,)
    w1f = wf[:c0].T                             # (64, 16)
    w2f = wf[c0:c0 + c1b].T                     # (64, 32)
    w3f = wf[c0 + c1b:].T                       # (64, 64)

    # ---- coarse branches on PRE-STRIDED inputs (1x1x1 conv + ReLU commute
    # ---- with spatial subsampling), projected to the final 64 channels.
    x2 = x_ncdhw[:, :, ::2, ::2, ::2].reshape(n, cin, m2)
    x3 = x_ncdhw[:, :, ::4, ::4, ::4].reshape(n, cin, m3)
    if m2_pad != m2:
        x2 = jnp.pad(x2, ((0, 0), (0, 0), (0, m2_pad - m2)))
    if m3_pad != m3:
        x3 = jnp.pad(x3, ((0, 0), (0, 0), (0, m3_pad - m3)))
    t2 = coarse_branch_proj(x2, wb2, bb2, w2f, tmc=tk2)    # (N, 64, m2_pad)
    t3 = coarse_branch_proj(x3, wb3, bb3, w3f, tmc=tk3)    # (N, 64, m3_pad)

    # ---- trilinear (align_corners=True) interpolation matrices; zero rows in
    # ---- the padded coarse tail make the branch padding contributions vanish.
    kt2 = _kron_interp_T((d, h, w), (d // 2, h // 2, w // 2), m2_pad, m_pad)
    kt3 = _kron_interp_T((d, h, w), (d // 4, h // 4, w // 4), m3_pad, m_pad)

    # ---- fused final kernel: top-branch conv+ReLU, final 1x1x1 conv, and the
    # ---- upsample-add of both coarse branches in ONE pass over the volume;
    # ---- output is emitted directly in NCDHW order.
    x_cf = x_ncdhw.reshape(n, cin, m)           # NCDHW is already channels-first
    if m_pad != m:
        # TODO(synk): ragged tail handled by pad+slice (4-ch input / 64-ch out);
        #             mask the last tile in-kernel at production sizes.
        x_cf = jnp.pad(x_cf, ((0, 0), (0, 0), (0, m_pad - m)))
    out = final_fused(x_cf, t2, kt2, t3, kt3, wb1, bb1, w1f, bf,
                      tm=tm, tk2=tk2, tk3=tk3, out_dtype=out_dtype)
    if m_pad != m:
        out = out[:, :, :m]

    # PyTorch: feats.view(N, C*D, H, W) -- free reshape (already NCDHW order).
    return out.reshape(n, FINAL_CONV_OUT * d, h, w)


# ----------------------------------------------------------------------------
# Pure-JAX reference (same stand-in topology) for a loose numerical check.
# ----------------------------------------------------------------------------
def _reference_forward(x, params):
    n, cin, d, h, w = x.shape
    c0, c1b, _ = BRANCH_CHANNELS
    (wb1, bb1), (wb2, bb2), (wb3, bb3) = params["branches"]
    wf, bf = params["final_w"], params["final_b"]

    def pconv(xx, wgt, b):
        return jax.nn.relu(jnp.einsum('ncm,co->nom', xx, wgt)
                           + b[None, :, None])

    m = d * h * w
    feat1 = pconv(x.reshape(n, cin, m), wb1, bb1)
    feat2 = pconv(x[:, :, ::2, ::2, ::2].reshape(n, cin, -1), wb2, bb2)
    feat3 = pconv(x[:, :, ::4, ::4, ::4].reshape(n, cin, -1), wb3, bb3)
    k2 = jnp.asarray(_kron_np((d, h, w), (d // 2, h // 2, w // 2)))
    k3 = jnp.asarray(_kron_np((d, h, w), (d // 4, h // 4, w // 4)))
    up2 = jnp.einsum('ncq,pq->ncp', feat2, k2)
    up3 = jnp.einsum('ncq,pq->ncp', feat3, k3)
    cat = jnp.concatenate([feat1, up2, up3], axis=1)
    out = jnp.einsum('ncm,co->nom', cat, wf) + bf[None, :, None]
    return out.reshape(n, FINAL_CONV_OUT * d, h, w)


# ----------------------------------------------------------------------------
if __name__ == "__main__":
    N, CIN, D, H, W = 2, 4, 8, 8, 8
    key = jax.random.PRNGKey(0)
    k_in, k_par = jax.random.split(key)

    x = jax.random.normal(k_in, (N, CIN, D, H, W), jnp.float32)
    params = init_params(CIN, k_par)

    fwd = jax.jit(functools.partial(hrnet3d_forward, final_fuse="conat_conv"))
    out = jax.block_until_ready(fwd(x, params))

    expected = (N, FINAL_CONV_OUT * D, H, W)
    assert out.shape == expected, (out.shape, expected)
    assert jnp.isfinite(out).all()

    # bf16 intermediates -> loose tolerance vs the f32 reference.
    ref = _reference_forward(x, params)
    err = float(jnp.max(jnp.abs(out.astype(jnp.float32) - ref)))
    tol = 5e-2 * max(1.0, float(jnp.max(jnp.abs(ref))))
    assert err <= tol, (err, tol)

    print("KERNEL_OK")
</pallas_src>

<mosaic_0001>
module attributes {stable_mosaic.version = 11 : i64} {
  func.func @_coarse_branch_kernel(%arg0: i32, %arg1: i32, %arg2: memref<1x4x8xf32, #tpu.memory_space<vmem>>, %arg3: memref<64x4xf32, #tpu.memory_space<vmem>>, %arg4: memref<64x1xf32, #tpu.memory_space<vmem>>, %arg5: memref<64x64xf32, #tpu.memory_space<vmem>>, %arg6: memref<1x64x8xbf16, #tpu.memory_space<vmem>>) attributes {dimension_semantics = [#tpu.dimension_semantics<parallel>, #tpu.dimension_semantics<parallel>], iteration_bounds = array<i64: 2, 1>, scalar_prefetch = 0 : i64, scratch_operands = 0 : i64, tpu.core_type = #tpu.core_type<tc>, window_params = [{transform_indices = @transform_0, window_bounds = array<i64: 1, 4, 8>}, {pipeline_mode = #tpu.pipeline_mode<synchronous>, transform_indices = @transform_1, window_bounds = array<i64: 64, 4>}, {pipeline_mode = #tpu.pipeline_mode<synchronous>, transform_indices = @transform_2, window_bounds = array<i64: 64, 1>}, {pipeline_mode = #tpu.pipeline_mode<synchronous>, transform_indices = @transform_3, window_bounds = array<i64: 64, 64>}, {transform_indices = @transform_4, window_bounds = array<i64: 1, 64, 8>}]} {
    %c0 = arith.constant 0 : index
    %c0_0 = arith.constant 0 : index
    %0 = vector.load %arg3[%c0, %c0_0] : memref<64x4xf32, #tpu.memory_space<vmem>>, vector<64x4xf32>
    %c0_1 = arith.constant 0 : index
    %c0_2 = arith.constant 0 : index
    %c0_3 = arith.constant 0 : index
    %1 = vector.load %arg2[%c0_1, %c0_2, %c0_3] : memref<1x4x8xf32, #tpu.memory_space<vmem>>, vector<1x4x8xf32>
    %2 = vector.shape_cast %1 : vector<1x4x8xf32> to vector<4x8xf32>
    %cst = arith.constant dense<0.000000e+00> : vector<64x8xf32>
    %3 = tpu.matmul %0, %2, %cst {dimension_numbers = #tpu.dot_dimension_numbers<[1], [0], [0], [1], [0, 0, 1, 1], [], []>} : vector<64x4xf32>, vector<4x8xf32>, vector<64x8xf32> -> vector<64x8xf32>
    %c0_4 = arith.constant 0 : index
    %c0_5 = arith.constant 0 : index
    %4 = vector.load %arg4[%c0_4, %c0_5] : memref<64x1xf32, #tpu.memory_space<vmem>>, vector<64x1xf32>
    %5 = vector.broadcast %4 : vector<64x1xf32> to vector<64x8xf32>
    %6 = arith.addf %3, %5 : vector<64x8xf32>
    %cst_6 = arith.constant 0.000000e+00 : f32
    %7 = vector.broadcast %cst_6 : f32 to vector<64x8xf32>
    %8 = arith.maximumf %6, %7 : vector<64x8xf32>
    %c0_7 = arith.constant 0 : index
    %c0_8 = arith.constant 0 : index
    %9 = vector.load %arg5[%c0_7, %c0_8] : memref<64x64xf32, #tpu.memory_space<vmem>>, vector<64x64xf32>
    %cst_9 = arith.constant dense<0.000000e+00> : vector<64x8xf32>
    %10 = tpu.matmul %9, %8, %cst_9 {dimension_numbers = #tpu.dot_dimension_numbers<[1], [0], [0], [1], [0, 0, 1, 1], [], []>} : vector<64x64xf32>, vector<64x8xf32>, vector<64x8xf32> -> vector<64x8xf32>
    %11 = arith.truncf %10 : vector<64x8xf32> to vector<64x8xbf16>
    %c0_10 = arith.constant 0 : index
    %c0_11 = arith.constant 0 : index
    %c0_12 = arith.constant 0 : index
    %12 = vector.load %arg6[%c0_10, %c0_11, %c0_12] : memref<1x64x8xbf16, #tpu.memory_space<vmem>>, vector<1x64x8xbf16>
    %13 = vector.shape_cast %12 : vector<1x64x8xbf16> to vector<64x8xbf16>
    %14 = vector.shape_cast %11 : vector<64x8xbf16> to vector<1x64x8xbf16>
    tpu.vector_store %arg6[%c0_10, %c0_11, %c0_12], %14 {strides = array<i32>} : memref<1x64x8xbf16, #tpu.memory_space<vmem>>, vector<1x64x8xbf16>,
    return
  }
  func.func @transform_0(%arg0: i32, %arg1: i32) -> (i32, i32, i32) {
    %c0_i32 = arith.constant 0 : i32
    %c0_i32_0 = arith.constant 0 : i32
    return %arg0, %c0_i32, %arg1 : i32, i32, i32
  }
  func.func @transform_1(%arg0: i32, %arg1: i32) -> (i32, i32) {
    %c0_i32 = arith.constant 0 : i32
    %c0_i32_0 = arith.constant 0 : i32
    %c0_i32_1 = arith.constant 0 : i32
    return %c0_i32, %c0_i32_0 : i32, i32
  }
  func.func @transform_2(%arg0: i32, %arg1: i32) -> (i32, i32) {
    %c0_i32 = arith.constant 0 : i32
    %c0_i32_0 = arith.constant 0 : i32
    %c0_i32_1 = arith.constant 0 : i32
    return %c0_i32, %c0_i32_0 : i32, i32
  }
  func.func @transform_3(%arg0: i32, %arg1: i32) -> (i32, i32) {
    %c0_i32 = arith.constant 0 : i32
    %c0_i32_0 = arith.constant 0 : i32
    %c0_i32_1 = arith.constant 0 : i32
    return %c0_i32, %c0_i32_0 : i32, i32
  }
  func.func @transform_4(%arg0: i32, %arg1: i32) -> (i32, i32, i32) {
    %c0_i32 = arith.constant 0 : i32
    %c0_i32_0 = arith.constant 0 : i32
    return %arg0, %c0_i32, %arg1 : i32, i32, i32
  }
}

module attributes {stable_mosaic.version = 11 : i64} {
  func.func @_coarse_branch_kernel(%arg0: i32, %arg1: i32, %arg2: memref<1x4x64xf32, #tpu.memory_space<vmem>>, %arg3: memref<32x4xf32, #tpu.memory_space<vmem>>, %arg4: memref<32x1xf32, #tpu.memory_space<vmem>>, %arg5: memref<64x32xf32, #tpu.memory_space<vmem>>, %arg6: memref<1x64x64xbf16, #tpu.memory_space<vmem>>) attributes {dimension_semantics = [#tpu.dimension_semantics<parallel>, #tpu.dimension_semantics<parallel>], iteration_bounds = array<i64: 2, 1>, scalar_prefetch = 0 : i64, scratch_operands = 0 : i64, tpu.core_type = #tpu.core_type<tc>, window_params = [{transform_indices = @transform_0, window_bounds = array<i64: 1, 4, 64>}, {pipeline_mode = #tpu.pipeline_mode<synchronous>, transform_indices = @transform_1, window_bounds = array<i64: 32, 4>}, {pipeline_mode = #tpu.pipeline_mode<synchronous>, transform_indices = @transform_2, window_bounds = array<i64: 32, 1>}, {pipeline_mode = #tpu.pipeline_mode<synchronous>, transform_indices = @transform_3, window_bounds = array<i64: 64, 32>}, {transform_indices = @transform_4, window_bounds = array<i64: 1, 64, 64>}]} {
    %c0 = arith.constant 0 : index
    %c0_0 = arith.constant 0 : index
    %0 = vector.load %arg3[%c0, %c0_0] : memref<32x4xf32, #tpu.memory_space<vmem>>, vector<32x4xf32>
    %c0_1 = arith.constant 0 : index
    %c0_2 = arith.constant 0 : index
    %c0_3 = arith.constant 0 : index
    %1 = vector.load %arg2[%c0_1, %c0_2, %c0_3] : memref<1x4x64xf32, #tpu.memory_space<vmem>>, vector<1x4x64xf32>
    %2 = vector.shape_cast %1 : vector<1x4x64xf32> to vector<4x64xf32>
    %cst = arith.constant dense<0.000000e+00> : vector<32x64xf32>
    %3 = tpu.matmul %0, %2, %cst {dimension_numbers = #tpu.dot_dimension_numbers<[1], [0], [0], [1], [0, 0, 1, 1], [], []>} : vector<32x4xf32>, vector<4x64xf32>, vector<32x64xf32> -> vector<32x64xf32>
    %c0_4 = arith.constant 0 : index
    %c0_5 = arith.constant 0 : index
    %4 = vector.load %arg4[%c0_4, %c0_5] : memref<32x1xf32, #tpu.memory_space<vmem>>, vector<32x1xf32>
    %5 = vector.broadcast %4 : vector<32x1xf32> to vector<32x64xf32>
    %6 = arith.addf %3, %5 : vector<32x64xf32>
    %cst_6 = arith.constant 0.000000e+00 : f32
    %7 = vector.broadcast %cst_6 : f32 to vector<32x64xf32>
    %8 = arith.maximumf %6, %7 : vector<32x64xf32>
    %c0_7 = arith.constant 0 : index
    %c0_8 = arith.constant 0 : index
    %9 = vector.load %arg5[%c0_7, %c0_8] : memref<64x32xf32, #tpu.memory_space<vmem>>, vector<64x32xf32>
    %cst_9 = arith.constant dense<0.000000e+00> : vector<64x64xf32>
    %10 = tpu.matmul %9, %8, %cst_9 {dimension_numbers = #tpu.dot_dimension_numbers<[1], [0], [0], [1], [0, 0, 1, 1], [], []>} : vector<64x32xf32>, vector<32x64xf32>, vector<64x64xf32> -> vector<64x64xf32>
    %11 = arith.truncf %10 : vector<64x64xf32> to vector<64x64xbf16>
    %c0_10 = arith.constant 0 : index
    %c0_11 = arith.constant 0 : index
    %c0_12 = arith.constant 0 : index
    %12 = vector.load %arg6[%c0_10, %c0_11, %c0_12] : memref<1x64x64xbf16, #tpu.memory_space<vmem>>, vector<1x64x64xbf16>
    %13 = vector.shape_cast %12 : vector<1x64x64xbf16> to vector<64x64xbf16>
    %14 = vector.shape_cast %11 : vector<64x64xbf16> to vector<1x64x64xbf16>
    tpu.vector_store %arg6[%c0_10, %c0_11, %c0_12], %14 {strides = array<i32>} : memref<1x64x64xbf16, #tpu.memory_space<vmem>>, vector<1x64x64xbf16>,
    return
  }
  func.func @transform_0(%arg0: i32, %arg1: i32) -> (i32, i32, i32) {
    %c0_i32 = arith.constant 0 : i32
    %c0_i32_0 = arith.constant 0 : i32
    return %arg0, %c0_i32, %arg1 : i32, i32, i32
  }
  func.func @transform_1(%arg0: i32, %arg1: i32) -> (i32, i32) {
    %c0_i32 = arith.constant 0 : i32
    %c0_i32_0 = arith.constant 0 : i32
    %c0_i32_1 = arith.constant 0 : i32
    return %c0_i32, %c0_i32_0 : i32, i32
  }
  func.func @transform_2(%arg0: i32, %arg1: i32) -> (i32, i32) {
    %c0_i32 = arith.constant 0 : i32
    %c0_i32_0 = arith.constant 0 : i32
    %c0_i32_1 = arith.constant 0 : i32
    return %c0_i32, %c0_i32_0 : i32, i32
  }
  func.func @transform_3(%arg0: i32, %arg1: i32) -> (i32, i32) {
    %c0_i32 = arith.constant 0 : i32
    %c0_i32_0 = arith.constant 0 : i32
    %c0_i32_1 = arith.constant 0 : i32
    return %c0_i32, %c0_i32_0 : i32, i32
  }
  func.func @transform_4(%arg0: i32, %arg1: i32) -> (i32, i32, i32) {
    %c0_i32 = arith.constant 0 : i32
    %c0_i32_0 = arith.constant 0 : i32
    return %arg0, %c0_i32, %arg1 : i32, i32, i32
  }
}

module attributes {stable_mosaic.version = 11 : i64} {
  func.func @_final_fused_kernel(%arg0: i32, %arg1: i32, %arg2: i32, %arg3: memref<1x4x512xf32, #tpu.memory_space<vmem>>, %arg4: memref<1x64x64xbf16, #tpu.memory_space<vmem>>, %arg5: memref<64x512xbf16, #tpu.memory_space<vmem>>, %arg6: memref<1x64x8xbf16, #tpu.memory_space<vmem>>, %arg7: memref<8x512xbf16, #tpu.memory_space<vmem>>, %arg8: memref<16x4xf32, #tpu.memory_space<vmem>>, %arg9: memref<16x1xf32, #tpu.memory_space<vmem>>, %arg10: memref<64x16xf32, #tpu.memory_space<vmem>>, %arg11: memref<64x1xf32, #tpu.memory_space<vmem>>, %arg12: memref<1x64x512xf32, #tpu.memory_space<vmem>>, %arg13: memref<64x512xf32, #tpu.memory_space<vmem>>) attributes {dimension_semantics = [#tpu.dimension_semantics<parallel>, #tpu.dimension_semantics<parallel>, #tpu.dimension_semantics<arbitrary>], iteration_bounds = array<i64: 2, 1, 1>, scalar_prefetch = 0 : i64, scratch_operands = 1 : i64, tpu.core_type = #tpu.core_type<tc>, window_params = [{transform_indices = @transform_0, window_bounds = array<i64: 1, 4, 512>}, {transform_indices = @transform_1, window_bounds = array<i64: 1, 64, 64>}, {transform_indices = @transform_2, window_bounds = array<i64: 64, 512>}, {transform_indices = @transform_3, window_bounds = array<i64: 1, 64, 8>}, {transform_indices = @transform_4, window_bounds = array<i64: 8, 512>}, {pipeline_mode = #tpu.pipeline_mode<synchronous>, transform_indices = @transform_5, window_bounds = array<i64: 16, 4>}, {pipeline_mode = #tpu.pipeline_mode<synchronous>, transform_indices = @transform_6, window_bounds = array<i64: 16, 1>}, {pipeline_mode = #tpu.pipeline_mode<synchronous>, transform_indices = @transform_7, window_bounds = array<i64: 64, 16>}, {pipeline_mode = #tpu.pipeline_mode<synchronous>, transform_indices = @transform_8, window_bounds = array<i64: 64, 1>}, {transform_indices = @transform_9, window_bounds = array<i64: 1, 64, 512>}]} {
    %c0_i32 = arith.constant 0 : i32
    %0 = arith.cmpi eq, %arg2, %c0_i32 : i32
    %1 = arith.extui %0 : i1 to i32
    %c0_i32_0 = arith.constant 0 : i32
    %2 = arith.cmpi ne, %1, %c0_i32_0 : i32
    scf.if %2 {
      %c0_21 = arith.constant 0 : index
      %c0_22 = arith.constant 0 : index
      %20 = vector.load %arg8[%c0_21, %c0_22] : memref<16x4xf32, #tpu.memory_space<vmem>>, vector<16x4xf32>
      %c0_23 = arith.constant 0 : index
      %c0_24 = arith.constant 0 : index
      %c0_25 = arith.constant 0 : index
      %21 = vector.load %arg3[%c0_23, %c0_24, %c0_25] : memref<1x4x512xf32, #tpu.memory_space<vmem>>, vector<1x4x512xf32>
      %22 = vector.shape_cast %21 : vector<1x4x512xf32> to vector<4x512xf32>
      %cst_26 = arith.constant dense<0.000000e+00> : vector<16x512xf32>
      %23 = tpu.matmul %20, %22, %cst_26 {dimension_numbers = #tpu.dot_dimension_numbers<[1], [0], [0], [1], [0, 0, 1, 1], [], []>} : vector<16x4xf32>, vector<4x512xf32>, vector<16x512xf32> -> vector<16x512xf32>
      %c0_27 = arith.constant 0 : index
      %c0_28 = arith.constant 0 : index
      %24 = vector.load %arg9[%c0_27, %c0_28] : memref<16x1xf32, #tpu.memory_space<vmem>>, vector<16x1xf32>
      %25 = vector.broadcast %24 : vector<16x1xf32> to vector<16x512xf32>
      %26 = arith.addf %23, %25 : vector<16x512xf32>
      %cst_29 = arith.constant 0.000000e+00 : f32
      %27 = vector.broadcast %cst_29 : f32 to vector<16x512xf32>
      %28 = arith.maximumf %26, %27 : vector<16x512xf32>
      %c0_30 = arith.constant 0 : index
      %c0_31 = arith.constant 0 : index
      %29 = vector.load %arg10[%c0_30, %c0_31] : memref<64x16xf32, #tpu.memory_space<vmem>>, vector<64x16xf32>
      %cst_32 = arith.constant dense<0.000000e+00> : vector<64x512xf32>
      %30 = tpu.matmul %29, %28, %cst_32 {dimension_numbers = #tpu.dot_dimension_numbers<[1], [0], [0], [1], [0, 0, 1, 1], [], []>} : vector<64x16xf32>, vector<16x512xf32>, vector<64x512xf32> -> vector<64x512xf32>
      %c0_33 = arith.constant 0 : index
      %c0_34 = arith.constant 0 : index
      %31 = vector.load %arg11[%c0_33, %c0_34] : memref<64x1xf32, #tpu.memory_space<vmem>>, vector<64x1xf32>
      %32 = vector.broadcast %31 : vector<64x1xf32> to vector<64x512xf32>
      %33 = arith.addf %30, %32 : vector<64x512xf32>
      %c0_35 = arith.constant 0 : index
      %c0_36 = arith.constant 0 : index
      %34 = vector.load %arg13[%c0_35, %c0_36] : memref<64x512xf32, #tpu.memory_space<vmem>>, vector<64x512xf32>
      tpu.vector_store %arg13[%c0_35, %c0_36], %33 {strides = array<i32>} : memref<64x512xf32, #tpu.memory_space<vmem>>, vector<64x512xf32>,
    } else {
    }
    %c0 = arith.constant 0 : index
    %c0_1 = arith.constant 0 : index
    %3 = vector.load %arg13[%c0, %c0_1] : memref<64x512xf32, #tpu.memory_space<vmem>>, vector<64x512xf32>
    %c0_2 = arith.constant 0 : index
    %c0_3 = arith.constant 0 : index
    %c0_4 = arith.constant 0 : index
    %4 = vector.load %arg4[%c0_2, %c0_3, %c0_4] : memref<1x64x64xbf16, #tpu.memory_space<vmem>>, vector<1x64x64xbf16>
    %5 = vector.shape_cast %4 : vector<1x64x64xbf16> to vector<64x64xbf16>
    %c0_5 = arith.constant 0 : index
    %c0_6 = arith.constant 0 : index
    %6 = vector.load %arg5[%c0_5, %c0_6] : memref<64x512xbf16, #tpu.memory_space<vmem>>, vector<64x512xbf16>
    %cst = arith.constant dense<0.000000e+00> : vector<64x512xf32>
    %7 = tpu.matmul %5, %6, %cst {dimension_numbers = #tpu.dot_dimension_numbers<[1], [0], [0], [1], [0, 0, 1, 1], [], []>} : vector<64x64xbf16>, vector<64x512xbf16>, vector<64x512xf32> -> vector<64x512xf32>
    %8 = arith.addf %3, %7 : vector<64x512xf32>
    %c0_7 = arith.constant 0 : index
    %c0_8 = arith.constant 0 : index
    %9 = vector.load %arg13[%c0_7, %c0_8] : memref<64x512xf32, #tpu.memory_space<vmem>>, vector<64x512xf32>
    tpu.vector_store %arg13[%c0_7, %c0_8], %8 {strides = array<i32>} : memref<64x512xf32, #tpu.memory_space<vmem>>, vector<64x512xf32>,
    %c0_9 = arith.constant 0 : index
    %c0_10 = arith.constant 0 : index
    %10 = vector.load %arg13[%c0_9, %c0_10] : memref<64x512xf32, #tpu.memory_space<vmem>>, vector<64x512xf32>
    %c0_11 = arith.constant 0 : index
    %c0_12 = arith.constant 0 : index
    %c0_13 = arith.constant 0 : index
    %11 = vector.load %arg6[%c0_11, %c0_12, %c0_13] : memref<1x64x8xbf16, #tpu.memory_space<vmem>>, vector<1x64x8xbf16>
    %12 = vector.shape_cast %11 : vector<1x64x8xbf16> to vector<64x8xbf16>
    %c0_14 = arith.constant 0 : index
    %c0_15 = arith.constant 0 : index
    %13 = vector.load %arg7[%c0_14, %c0_15] : memref<8x512xbf16, #tpu.memory_space<vmem>>, vector<8x512xbf16>
    %cst_16 = arith.constant dense<0.000000e+00> : vector<64x512xf32>
    %14 = tpu.matmul %12, %13, %cst_16 {dimension_numbers = #tpu.dot_dimension_numbers<[1], [0], [0], [1], [0, 0, 1, 1], [], []>} : vector<64x8xbf16>, vector<8x512xbf16>, vector<64x512xf32> -> vector<64x512xf32>
    %15 = arith.addf %10, %14 : vector<64x512xf32>
    %c0_17 = arith.constant 0 : index
    %c0_18 = arith.constant 0 : index
    %16 = vector.load %arg13[%c0_17, %c0_18] : memref<64x512xf32, #tpu.memory_space<vmem>>, vector<64x512xf32>
    tpu.vector_store %arg13[%c0_17, %c0_18], %15 {strides = array<i32>} : memref<64x512xf32, #tpu.memory_space<vmem>>, vector<64x512xf32>,
    %c0_i32_19 = arith.constant 0 : i32
    %17 = arith.cmpi eq, %arg2, %c0_i32_19 : i32
    %18 = arith.extui %17 : i1 to i32
    %c0_i32_20 = arith.constant 0 : i32
    %19 = arith.cmpi ne, %18, %c0_i32_20 : i32
    scf.if %19 {
      %c0_21 = arith.constant 0 : index
      %c0_22 = arith.constant 0 : index
      %20 = vector.load %arg13[%c0_21, %c0_22] : memref<64x512xf32, #tpu.memory_space<vmem>>, vector<64x512xf32>
      %c0_23 = arith.constant 0 : index
      %c0_24 = arith.constant 0 : index
      %c0_25 = arith.constant 0 : index
      %21 = vector.load %arg12[%c0_23, %c0_24, %c0_25] : memref<1x64x512xf32, #tpu.memory_space<vmem>>, vector<1x64x512xf32>
      %22 = vector.shape_cast %21 : vector<1x64x512xf32> to vector<64x512xf32>
      %23 = vector.shape_cast %20 : vector<64x512xf32> to vector<1x64x512xf32>
      tpu.vector_store %arg12[%c0_23, %c0_24, %c0_25], %23 {strides = array<i32>} : memref<1x64x512xf32, #tpu.memory_space<vmem>>, vector<1x64x512xf32>,
    } else {
    }
    return
  }
  func.func @transform_0(%arg0: i32, %arg1: i32, %arg2: i32) -> (i32, i32, i32) {
    %c0_i32 = arith.constant 0 : i32
    %c0_i32_0 = arith.constant 0 : i32
    return %arg0, %c0_i32, %arg1 : i32, i32, i32
  }
  func.func @transform_1(%arg0: i32, %arg1: i32, %arg2: i32) -> (i32, i32, i32) {
    %c0_i32 = arith.constant 0 : i32
    %c0_i32_0 = arith.constant 0 : i32
    return %arg0, %c0_i32, %arg2 : i32, i32, i32
  }
  func.func @transform_2(%arg0: i32, %arg1: i32, %arg2: i32) -> (i32, i32) {
    %c0_i32 = arith.constant 0 : i32
    return %arg2, %arg1 : i32, i32
  }
  func.func @transform_3(%arg0: i32, %arg1: i32, %arg2: i32) -> (i32, i32, i32) {
    %c0_i32 = arith.constant 0 : i32
    %c0_i32_0 = arith.constant 0 : i32
    return %arg0, %c0_i32, %arg2 : i32, i32, i32
  }
  func.func @transform_4(%arg0: i32, %arg1: i32, %arg2: i32) -> (i32, i32) {
    %c0_i32 = arith.constant 0 : i32
    return %arg2, %arg1 : i32, i32
  }
  func.func @transform_5(%arg0: i32, %arg1: i32, %arg2: i32) -> (i32, i32) {
    %c0_i32 = arith.constant 0 : i32
    %c0_i32_0 = arith.constant 0 : i32
    %c0_i32_1 = arith.constant 0 : i32
    return %c0_i32, %c0_i32_0 : i32, i32
  }
  func.func @transform_6(%arg0: i32, %arg1: i32, %arg2: i32) -> (i32, i32) {
    %c0_i32 = arith.constant 0 : i32
    %c0_i32_0 = arith.constant 0 : i32
    %c0_i32_1 = arith.constant 0 : i32
    return %c0_i32, %c0_i32_0 : i32, i32
  }
  func.func @transform_7(%arg0: i32, %arg1: i32, %arg2: i32) -> (i32, i32) {
    %c0_i32 = arith.constant 0 : i32
    %c0_i32_0 = arith.constant 0 : i32
    %c0_i32_1 = arith.constant 0 : i32
    return %c0_i32, %c0_i32_0 : i32, i32
  }
  func.func @transform_8(%arg0: i32, %arg1: i32, %arg2: i32) -> (i32, i32) {
    %c0_i32 = arith.constant 0 : i32
    %c0_i32_0 = arith.constant 0 : i32
    %c0_i32_1 = arith.constant 0 : i32
    return %c0_i32, %c0_i32_0 : i32, i32
  }
  func.func @transform_9(%arg0: i32, %arg1: i32, %arg2: i32) -> (i32, i32, i32) {
    %c0_i32 = arith.constant 0 : i32
    %c0_i32_0 = arith.constant 0 : i32
    return %arg0, %c0_i32, %arg1 : i32, i32, i32
  }
}

</mosaic_0001>

<bundles_post_ra>
// kernel: hrnet3d_forward.4
= control target key start
LH: loop header
LB: loop body
LE: loop exit
PB: predicated region body
PF: predicated region fallthrough
CT: control target
= control target key end

     0   :  { %s896_s15 = smov 0   ;;  %s898_s16 = smov 0   ;;  %s1029_s0 = inlined_call_operand.vmem [shape: f32[2,4,8], index: 0, kind: input, shape index: {}]   ;;  %s1030_s1 = inlined_call_operand.vmem [shape: f32[64,4], index: 1, kind: input, shape index: {}]   ;;  %s1031_s2 = inlined_call_operand.vmem [shape: f32[64,1], index: 2, kind: input, shape index: {}]   ;;  %s1032_s3 = inlined_call_operand.vmem [shape: f32[64,64], index: 3, kind: input, shape index: {}]   ;;  %s1033_s4 = inlined_call_operand.vmem [shape: bf16[2,64,8], index: 4, kind: output, shape index: {}]  }
   0x1   :  { %s900_s17 = smov 0  }
   0x2 LB: > { %s26_s18 = sadd.s32 1, %s864_s16  ;;  %p688_p0 = scmp.ge.s32.totalorder %s868_s17, 1  ;;  %s868_s17 = sphi %s900_s17, %s14_s17   ;;  %s864_s16 = sphi %s898_s16, %s1035_s16   ;;  %s860_s15 = sphi %s896_s15, %s1034_s15  }
   0x3   : > { %p28_p1 = scmp.ge.s32.totalorder %s26_s18, 2  ;;  %p180_p2 = scmp.lt.s32.totalorder %s868_s17, 3 }
   0x5   : > { %s1037_s18 = smov (%p28_p1, %s26_s18), 0  ;;  %p181_p3 = pnand %p688_p0, %p180_p2 }
   0x6   : > { %p211_p4 = scmp.lt.s32.totalorder (!%p181_p3), %s860_s15, 1  ;;  %v226_v0 = vld [vmem:[%s1030_s1] sm:$0xff] (!%p181_p3)  ;;  %vm283_vm0 = vcmask (!%p181_p3), 31744   ;;  %v870_v1 = vmov (!%p181_p3), 0   ;;  %v237_v3 = vld [vmem:[%s1031_s2 + $0x10] sm:$0xff] (!%p181_p3)  ;;  %vm308_vm1 = vcmask (!%p181_p3), 1043456  }
   0x7   : > { %184 = sbr.rel (%p181_p3) target bundleno = 479 (0x1df), region = 36  ;;  %755 = vmatprep.mubr.msk.f32.mxu0 (!%p181_p3), %vm283_vm0, %v226_v0  ;;  %844 = vset.pattern.permute.xlu0 (!%p181_p3), %v870_v1  ;;  %v235_v2 = vld [vmem:[%s1031_s2] sm:$0xff] (!%p181_p3)  ;;  %v236_v4 = vld [vmem:[%s1031_s2 + $0x8] sm:$0xff] (!%p181_p3)  ;;  %v238_v5 = vld [vmem:[%s1031_s2 + $0x18] sm:$0xff] (!%p181_p3)  ;;  %vm433_vm2 = vcmask (!%p181_p3), 523264   ;;  %vm595_vm3 = vcmask (!%p181_p3), 60416  }
   0x8   : > { %845 = vset.pattern.permute.xlu1 (!%p181_p3), %v870_v1  ;;  %245 = vperm.xlu0 (!%p181_p3), %844, %v235_v2   ;;  %v227_v7 = vld [vmem:[%s1030_s1 + $0x8] sm:$0xff] (!%p181_p3)  ;;  %v228_v8 = vld [vmem:[%s1030_s1 + $0x10] sm:$0xff] (!%p181_p3)  ;;  %v239_v9 = vld [vmem:[%s1031_s2 + $0x20] sm:$0xff] (!%p181_p3) }
   0x9   : > { %255 = vperm.xlu1 (!%p181_p3), %845, %v237_v3   ;;  %v240_v10 = vld [vmem:[%s1031_s2 + $0x28] sm:$0xff] (!%p181_p3)  ;;  %v229_v11 = vld [vmem:[%s1030_s1 + $0x18] sm:$0xff] (!%p181_p3)  ;;  %v230_v12 = vld [vmem:[%s1030_s1 + $0x20] sm:$0xff] (!%p181_p3) }
   0xa   : > { %v241_v13 = vld [vmem:[%s1031_s2 + $0x30] sm:$0xff] (!%p181_p3)  ;;  %v242_v14 = vld [vmem:[%s1031_s2 + $0x38] sm:$0xff] (!%p181_p3)  ;;  %v231_v15 = vld [vmem:[%s1030_s1 + $0x28] sm:$0xff] (!%p181_p3) }
   0xb   : > { %v232_v16 = vld [vmem:[%s1030_s1 + $0x30] sm:$0xff] (!%p181_p3)  ;;  %v233_v17 = vld [vmem:[%s1030_s1 + $0x38] sm:$0xff] (!%p181_p3)  ;;  %v425_v19 = vld [vmem:[%s1032_s3] sm:$0xff] (!%p181_p3) }
   0xc   : > { %250 = vperm.xlu0 (!%p181_p3), %844, %v236_v4   ;;  %v427_v18 = vld [vmem:[%s1032_s3 + $0x10] sm:$0xff] (!%p181_p3)  ;;  %v428_v56 = vld [vmem:[%s1032_s3 + $0x18] sm:$0xff] (!%p181_p3)  ;;  %v426_v57 = vld [vmem:[%s1032_s3 + $0x8] sm:$0xff] (!%p181_p3) }
   0xd   : > { %260 = vperm.xlu1 (!%p181_p3), %845, %v238_v5   ;;  %786 = vmatprep.mubr.msk.f32.mxu1 (!%p181_p3), %vm433_vm2, %v427_v18  ;;  %v429_v58 = vld [vmem:[%s1032_s3 + $0x20] sm:$0xff] (!%p181_p3)  ;;  %v430_v59 = vld [vmem:[%s1032_s3 + $0x28] sm:$0xff] (!%p181_p3)  ;;  %v431_v60 = vld [vmem:[%s1032_s3 + $0x30] sm:$0xff] (!%p181_p3) }
   0xe   : > { %s1039_s15 = smov (!%p211_p4, %s860_s15), 1  ;;  %v432_v61 = vld [vmem:[%s1032_s3 + $0x38] sm:$0xff] }
   0xf   : > { %s689_s25 = sshll.u32 %s1039_s15, 2  ;;  %s719_s27 = sshll.u32 %s1039_s15, 5 }
  0x10   : > { %s217_s30 = scalar_lea.vmem %s1029_s0, %s689_s25  ;;  %265 = vperm.xlu0 %844, %v239_v9  }
  0x11   : > { %v234_v6 = vld [vmem:[%s217_s30] sm:$0xf]  ;;  %270 = vperm.xlu1 %845, %v240_v10   ;;  %s225_s30 = scalar_lea.vmem %s1033_s4, %s719_s27 }
  0x12   : > { %753 = vmatprep.subr.msk.mxu0 %vm308_vm1, %v234_v6 }
  0x13   : > { %754 = vmatpush3.msk.msra.mxu0 %vm308_vm1, %v234_v6 }
  0x14   : > { %756 = vmatmul.mubr.msk.f32.vlgmr.msra.gmra.mrb[0].mxu0 %vm283_vm0, %v227_v7  ;;  %275 = vperm.xlu0 %844, %v241_v13  }
  0x15   : > { %758 = vmatprep.mubr.msk.f32.mxu0 %vm283_vm0, %v228_v8  ;;  %280 = vperm.xlu1 %845, %v242_v14  }
  0x18   : > { %759 = vmatmul.mubr.msk.f32.gmra.mrb[2].mxu0 %vm283_vm0, %v229_v11 }
  0x19   : > { %761 = vmatprep.mubr.msk.f32.mxu0 %vm283_vm0, %v230_v12 }
  0x1c   : > { %762 = vmatmul.mubr.msk.f32.gmra.mrb[4].mxu0 %vm283_vm0, %v231_v15 }
  0x1d   : > { %764 = vmatprep.mubr.msk.f32.mxu0 %vm283_vm0, %v232_v16 }
  0x20   : > { %765 = vmatmul.mubr.msk.f32.gmra.mrb[6].mxu0 %vm283_vm0, %v233_v17 }
  0x21   : > { %783 = vmatprep.mubr.msk.f32.mxu0 %vm433_vm2, %v425_v19 }
  0x87   : > { %v246_v20 = vpop.permute.xlu0 %245 }
  0x88   : > { %v256_v21 = vpop.permute.xlu1 %255 }
  0x8b   : > { %v251_v22 = vpop.permute.xlu0 %250 }
  0x8c   : > { %v261_v23 = vpop.permute.xlu1 %260 }
  0x8f   : > { %v266_v36 = vpop.permute.xlu0 %265 }
  0x90   : > { %v271_v33 = vpop.permute.xlu1 %270 }
  0x93   : > { %v276_v48 = vpop.permute.xlu0 %275 }
  0x94   : > { %v281_v45 = vpop.permute.xlu1 %280 }
  0xe7   : > { %v757_v24 = vpop.f32.mrb[0].mxu0 }
  0xe8   : > { %v384_v25 = vadd.f32 %v757_v24, %v251_v22  ;;  %v378_v26 = vpop.f32.mrb[1].mxu0 }
  0xe9   : > { %v379_v27 = vadd.f32 %v378_v26, %v246_v20 }
  0xea   : > { %v418_v28 = vmax.f32 %v384_v25, 0.0 }
  0xeb   : > { %v417_v29 = vmax.f32 %v379_v27, 0.0  ;;  %v760_v30 = vpop.f32.mrb[2].mxu0 }
  0xec   : > { %v394_v31 = vadd.f32 %v760_v30, %v261_v23  ;;  %v388_v32 = vpop.f32.mrb[3].mxu0 }
  0xed   : > { %v795_v34 = vpack.c.bf16 %v418_v28, %v417_v29  ;;  %v389_v35 = vadd.f32 %v388_v32, %v256_v21 }
  0xee   : > { %v420_v37 = vmax.f32 %v394_v31, 0.0 }
  0xef   : > { %v419_v38 = vmax.f32 %v389_v35, 0.0  ;;  %v763_v39 = vpop.f32.mrb[4].mxu0  ;;  %796 = vmatprep.subr.bf16.mxu0 %v795_v34  ;;  %811 = vmatprep.subr.bf16.mxu1 %v795_v34 }
  0xf0   : > { %v404_v40 = vadd.f32 %v763_v39, %v271_v33  ;;  %v398_v41 = vpop.f32.mrb[5].mxu0  ;;  %798 = vmatpush3.bf16.msra.mxu0 %v795_v34  ;;  %815 = vmatpush3.bf16.msra.mxu1 %v795_v34 }
  0xf1   : > { %v799_v42 = vpack.c.bf16 %v420_v37, %v419_v38  ;;  %v399_v43 = vadd.f32 %v398_v41, %v266_v36 }
  0xf2   : > { %v422_v44 = vmax.f32 %v404_v40, 0.0 }
  0xf3   : > { %v421_v46 = vmax.f32 %v399_v43, 0.0  ;;  %v766_v47 = vpop.f32.mrb[6].mxu0  ;;  %800 = vmatprep.subr.bf16.mxu0 %v799_v42  ;;  %812 = vmatprep.subr.bf16.mxu1 %v799_v42 }
  0xf4   : > { %v414_v49 = vadd.f32 %v766_v47, %v281_v45  ;;  %v408_v50 = vpop.f32.mrb[7].mxu0  ;;  %802 = vmatpush3.bf16.msra.mxu0 %v799_v42  ;;  %816 = vmatpush3.bf16.msra.mxu1 %v799_v42 }
  0xf5   : > { %v803_v51 = vpack.c.bf16 %v422_v44, %v421_v46  ;;  %v409_v52 = vadd.f32 %v408_v50, %v276_v48 }
  0xf6   : > { %v424_v53 = vmax.f32 %v414_v49, 0.0 }
  0xf7   : > { %v423_v54 = vmax.f32 %v409_v52, 0.0  ;;  %804 = vmatprep.subr.bf16.mxu0 %v803_v51  ;;  %813 = vmatprep.subr.bf16.mxu1 %v803_v51 }
  0xf8   : > { %806 = vmatpush3.bf16.msra.mxu0 %v803_v51  ;;  %817 = vmatpush3.bf16.msra.mxu1 %v803_v51 }
  0xf9   : > { %v807_v55 = vpack.c.bf16 %v424_v53, %v423_v54 }
  0xfb   : > { %808 = vmatprep.subr.bf16.mxu0 %v807_v55  ;;  %814 = vmatprep.subr.bf16.mxu1 %v807_v55 }
  0xfc   : > { %810 = vmatpush3.bf16.msra.mxu0 %v807_v55  ;;  %818 = vmatpush3.bf16.msra.mxu1 %v807_v55 }
  0xff   : > { %787 = vmatmul.mubr.msk.f32.vlgmr.msra.gmra.mrb[0].mxu1 %vm433_vm2, %v428_v56  ;;  %784 = vmatmul.mubr.msk.f32.vlgmr.msra.gmra.mrb[8].mxu0 %vm433_vm2, %v426_v57 }
 0x100   : > { %789 = vmatprep.mubr.msk.f32.mxu1 %vm433_vm2, %v429_v58 }
 0x103   : > { %790 = vmatmul.mubr.msk.f32.gmra.mrb[2].mxu1 %vm433_vm2, %v430_v59 }
 0x104   : > { %792 = vmatprep.mubr.msk.f32.mxu1 %vm433_vm2, %v431_v60 }
 0x107   : > { %793 = vmatmul.mubr.msk.f32.gmra.mrb[4].mxu1 %vm433_vm2, %v432_v61 }
 0x1d2   : > { %v788_v62 = vpop.f32.mrb[0].mxu1  ;;  %v785_v63 = vpop.f32.mrb[8].mxu0 }
 0x1d3   : > { %v723_v0 = vpack.c.bf16 %v788_v62, %v788_v62  ;;  %v534_v1 = vpop.f32.mrb[1].mxu1  ;;  %v721_v2 = vpack.c.bf16 %v785_v63, %v785_v63  ;;  %v524_v3 = vpop.f32.mrb[9].mxu0 }
 0x1d4   : > { %v722_v4 = vpack.c.bf16 %v534_v1, %v534_v1  ;;  %v720_v5 = vpack.c.bf16 %v524_v3, %v524_v3 }
 0x1d5   : > { %599 = vst.msk [vmem:[%s225_s30 + $0xc] sm:$0xf] %vm595_vm3, %v723_v0  ;;  %597 = vst.msk [vmem:[%s225_s30 + $0x4] sm:$0xf] %vm595_vm3, %v721_v2 }
 0x1d6   : > { %598 = vst.msk [vmem:[%s225_s30 + $0x8] sm:$0xf] %vm595_vm3, %v722_v4  ;;  %v791_v6 = vpop.f32.mrb[2].mxu1  ;;  %596 = vst.msk [vmem:[%s225_s30] sm:$0xf] %vm595_vm3, %v720_v5 }
 0x1d7   : > { %v725_v7 = vpack.c.bf16 %v791_v6, %v791_v6  ;;  %v544_v8 = vpop.f32.mrb[3].mxu1 }
 0x1d8   : > { %v724_v9 = vpack.c.bf16 %v544_v8, %v544_v8 }
 0x1d9   : > { %601 = vst.msk [vmem:[%s225_s30 + $0x14] sm:$0xf] %vm595_vm3, %v725_v7 }
 0x1da   : > { %600 = vst.msk [vmem:[%s225_s30 + $0x10] sm:$0xf] %vm595_vm3, %v724_v9  ;;  %v794_v10 = vpop.f32.mrb[4].mxu1 }
 0x1db   : > { %v727_v11 = vpack.c.bf16 %v794_v10, %v794_v10  ;;  %v554_v12 = vpop.f32.mrb[5].mxu1 }
 0x1dc   : > { %v726_v13 = vpack.c.bf16 %v554_v12, %v554_v12 }
 0x1dd   : > { %603 = vst.msk [vmem:[%s225_s30 + $0x1c] sm:$0xf] %vm595_vm3, %v727_v11 }
 0x1de   : > { %602 = vst.msk [vmem:[%s225_s30 + $0x18] sm:$0xf] %vm595_vm3, %v726_v13 }
 0x1df PF: > { %s14_s17 = sadd.s32 1, %s868_s17   ;;  %s1034_s15 = smov %s864_s16 }
 0x1e0   : > { %p11_p5 = scmp.ge.s32.totalorder %s14_s17, 4   ;;  %s1035_s16 = smov %s1037_s18 }
 0x1e2   :  { %13 = sbr.rel (!%p11_p5) target bundleno = 2 (0x2), region = 66 }

// kernel: hrnet3d_forward.3
= control target key start
LH: loop header
LB: loop body
LE: loop exit
PB: predicated region body
PF: predicated region fallthrough
CT: control target
= control target key end

     0   :  { %s794_s15 = smov 0   ;;  %s796_s16 = smov 0   ;;  %s899_s0 = inlined_call_operand.vmem [shape: f32[2,4,64], index: 0, kind: input, shape index: {}]   ;;  %s900_s1 = inlined_call_operand.vmem [shape: f32[32,4], index: 1, kind: input, shape index: {}]   ;;  %s901_s2 = inlined_call_operand.vmem [shape: f32[32,1], index: 2, kind: input, shape index: {}]   ;;  %s902_s3 = inlined_call_operand.vmem [shape: f32[64,32], index: 3, kind: input, shape index: {}]   ;;  %s903_s4 = inlined_call_operand.vmem [shape: bf16[2,64,64], index: 4, kind: output, shape index: {}]  }
   0x1   :  { %s798_s17 = smov 0  }
   0x2 LB: > { %s26_s18 = sadd.s32 1, %s762_s16  ;;  %p624_p0 = scmp.ge.s32.totalorder %s766_s17, 1  ;;  %s766_s17 = sphi %s798_s17, %s14_s17   ;;  %s762_s16 = sphi %s796_s16, %s905_s16   ;;  %s758_s15 = sphi %s794_s15, %s904_s15  }
   0x3   : > { %p28_p1 = scmp.ge.s32.totalorder %s26_s18, 2  ;;  %p180_p2 = scmp.lt.s32.totalorder %s766_s17, 3 }
   0x5   : > { %s907_s18 = smov (%p28_p1, %s26_s18), 0  ;;  %p181_p3 = pnand %p624_p0, %p180_p2 }
   0x6   : > { %p211_p4 = scmp.lt.s32.totalorder (!%p181_p3), %s758_s15, 1  ;;  %v226_v0 = vld [vmem:[%s900_s1] sm:$0xff] (!%p181_p3)  ;;  %vm255_vm0 = vcmask (!%p181_p3), 31744   ;;  %v233_v2 = vld [vmem:[%s901_s2 + $0x10] sm:$0xff] (!%p181_p3)  ;;  %v768_v3 = vmov (!%p181_p3), 0   ;;  %vm268_vm1 = vcmask (!%p181_p3), 1043456  }
   0x7   : > { %184 = sbr.rel (%p181_p3) target bundleno = 471 (0x1d7), region = 36  ;;  %679 = vmatprep.mubr.msk.f32.mxu0 (!%p181_p3), %vm255_vm0, %v226_v0  ;;  %v231_v1 = vld [vmem:[%s901_s2] sm:$0xff] (!%p181_p3)  ;;  %742 = vset.pattern.permute.xlu0 (!%p181_p3), %v768_v3  ;;  %v232_v4 = vld [vmem:[%s901_s2 + $0x8] sm:$0xff] (!%p181_p3)  ;;  %v234_v5 = vld [vmem:[%s901_s2 + $0x18] sm:$0xff] (!%p181_p3)  ;;  %vm369_vm2 = vcmask (!%p181_p3), 261120   ;;  %vm531_vm3 = vcmask (!%p181_p3), 519168  }
   0x8   : > { %743 = vset.pattern.permute.xlu1 (!%p181_p3), %v768_v3  ;;  %237 = vperm.xlu0 (!%p181_p3), %742, %v231_v1   ;;  %v227_v7 = vld [vmem:[%s900_s1 + $0x8] sm:$0xff] (!%p181_p3)  ;;  %v228_v8 = vld [vmem:[%s900_s1 + $0x10] sm:$0xff] (!%p181_p3)  ;;  %v229_v9 = vld [vmem:[%s900_s1 + $0x18] sm:$0xff] (!%p181_p3) }
   0x9   : > { %247 = vperm.xlu1 (!%p181_p3), %743, %v233_v2   ;;  %v363_v10 = vld [vmem:[%s902_s3 + $0x10] sm:$0xff] (!%p181_p3)  ;;  %v361_v11 = vld [vmem:[%s902_s3] sm:$0xff] (!%p181_p3)  ;;  %v364_v30 = vld [vmem:[%s902_s3 + $0x18] sm:$0xff] (!%p181_p3) }
   0xa   : > { %696 = vmatprep.mubr.msk.f32.mxu1 (!%p181_p3), %vm369_vm2, %v363_v10  ;;  %v362_v31 = vld [vmem:[%s902_s3 + $0x8] sm:$0xff] (!%p181_p3)  ;;  %v365_v32 = vld [vmem:[%s902_s3 + $0x20] sm:$0xff] (!%p181_p3)  ;;  %v367_v34 = vld [vmem:[%s902_s3 + $0x30] sm:$0xff] (!%p181_p3) }
   0xb   : > { %v366_v33 = vld [vmem:[%s902_s3 + $0x28] sm:$0xff] (!%p181_p3)  ;;  %v368_v35 = vld [vmem:[%s902_s3 + $0x38] sm:$0xff] (!%p181_p3) }
   0xc   : > { %242 = vperm.xlu0 (!%p181_p3), %742, %v232_v4  }
   0xd   : > { %252 = vperm.xlu1 (!%p181_p3), %743, %v234_v5  }
   0xe   : > { %s909_s15 = smov (!%p211_p4, %s758_s15), 1 }
   0xf   : > { %s625_s25 = sshll.u32 %s909_s15, 2  ;;  %s651_s7 = sshll.u32 %s909_s15, 5 }
  0x10   : > { %s217_s30 = scalar_lea.vmem %s899_s0, %s625_s25  ;;  %s225_s10 = scalar_lea.vmem %s903_s4, %s651_s7 }
  0x11   : > { %v230_v6 = vld [vmem:[%s217_s30] sm:$0xf] }
  0x12   : > { %677 = vmatprep.subr.msk.mxu0 %vm268_vm1, %v230_v6 }
  0x13   : > { %678 = vmatpush3.msk.msra.mxu0 %vm268_vm1, %v230_v6 }
  0x14   : > { %680 = vmatmul.mubr.msk.f32.vlgmr.msra.gmra.mrb[0].mxu0 %vm255_vm0, %v227_v7 }
  0x15   : > { %682 = vmatprep.mubr.msk.f32.mxu0 %vm255_vm0, %v228_v8 }
  0x18   : > { %683 = vmatmul.mubr.msk.f32.gmra.mrb[2].mxu0 %vm255_vm0, %v229_v9 }
  0x19   : > { %693 = vmatprep.mubr.msk.f32.mxu0 %vm369_vm2, %v361_v11 }
  0x87   : > { %v238_v12 = vpop.permute.xlu0 %237 }
  0x88   : > { %v248_v13 = vpop.permute.xlu1 %247 }
  0x8b   : > { %v243_v14 = vpop.permute.xlu0 %242 }
  0x8c   : > { %v253_v20 = vpop.permute.xlu1 %252 }
  0xe7   : > { %v681_v15 = vpop.f32.mrb[0].mxu0 }
  0xe8   : > { %v344_v16 = vadd.f32 %v681_v15, %v243_v14  ;;  %v338_v17 = vpop.f32.mrb[1].mxu0 }
  0xe9   : > { %v339_v18 = vadd.f32 %v338_v17, %v238_v12 }
  0xea   : > { %v358_v19 = vmax.f32 %v344_v16, 0.0 }
  0xeb   : > { %v357_v21 = vmax.f32 %v339_v18, 0.0  ;;  %v684_v22 = vpop.f32.mrb[2].mxu0 }
  0xec   : > { %v354_v23 = vadd.f32 %v684_v22, %v253_v20  ;;  %v348_v24 = vpop.f32.mrb[3].mxu0 }
  0xed   : > { %v705_v25 = vpack.c.bf16 %v358_v19, %v357_v21  ;;  %v349_v26 = vadd.f32 %v348_v24, %v248_v13 }
  0xee   : > { %v360_v27 = vmax.f32 %v354_v23, 0.0 }
  0xef   : > { %v359_v28 = vmax.f32 %v349_v26, 0.0  ;;  %706 = vmatprep.subr.bf16.mxu0 %v705_v25  ;;  %713 = vmatprep.subr.bf16.mxu1 %v705_v25 }
  0xf0   : > { %708 = vmatpush3.bf16.msra.mxu0 %v705_v25  ;;  %715 = vmatpush3.bf16.msra.mxu1 %v705_v25 }
  0xf1   : > { %v709_v29 = vpack.c.bf16 %v360_v27, %v359_v28 }
  0xf3   : > { %710 = vmatprep.subr.bf16.mxu0 %v709_v29  ;;  %714 = vmatprep.subr.bf16.mxu1 %v709_v29 }
  0xf4   : > { %712 = vmatpush3.bf16.msra.mxu0 %v709_v29  ;;  %716 = vmatpush3.bf16.msra.mxu1 %v709_v29 }
  0xf7   : > { %697 = vmatmul.mubr.msk.f32.vlgmr.msra.gmra.mrb[0].mxu1 %vm369_vm2, %v364_v30  ;;  %694 = vmatmul.mubr.msk.f32.vlgmr.msra.gmra.mrb[4].mxu0 %vm369_vm2, %v362_v31 }
  0xf8   : > { %699 = vmatprep.mubr.msk.f32.mxu1 %vm369_vm2, %v365_v32 }
  0xfb   : > { %700 = vmatmul.mubr.msk.f32.gmra.mrb[2].mxu1 %vm369_vm2, %v366_v33 }
  0xfc   : > { %702 = vmatprep.mubr.msk.f32.mxu1 %vm369_vm2, %v367_v34 }
  0xff   : > { %703 = vmatmul.mubr.msk.f32.gmra.mrb[4].mxu1 %vm369_vm2, %v368_v35 }
 0x1ca   : > { %v698_v36 = vpop.f32.mrb[0].mxu1  ;;  %v695_v37 = vpop.f32.mrb[4].mxu0 }
 0x1cb   : > { %v655_v38 = vpack.c.bf16 %v698_v36, %v698_v36  ;;  %v470_v39 = vpop.f32.mrb[1].mxu1  ;;  %v653_v40 = vpack.c.bf16 %v695_v37, %v695_v37  ;;  %v460_v41 = vpop.f32.mrb[5].mxu0 }
 0x1cc   : > { %v654_v42 = vpack.c.bf16 %v470_v39, %v470_v39  ;;  %v652_v43 = vpack.c.bf16 %v460_v41, %v460_v41 }
 0x1cd   : > { %535 = vst.msk [vmem:[%s225_s10 + $0xc] sm:$0xf] %vm531_vm3, %v655_v38  ;;  %533 = vst.msk [vmem:[%s225_s10 + $0x4] sm:$0xf] %vm531_vm3, %v653_v40 }
 0x1ce   : > { %534 = vst.msk [vmem:[%s225_s10 + $0x8] sm:$0xf] %vm531_vm3, %v654_v42  ;;  %v701_v44 = vpop.f32.mrb[2].mxu1  ;;  %532 = vst.msk [vmem:[%s225_s10] sm:$0xf] %vm531_vm3, %v652_v43 }
 0x1cf   : > { %v657_v45 = vpack.c.bf16 %v701_v44, %v701_v44  ;;  %v480_v46 = vpop.f32.mrb[3].mxu1 }
 0x1d0   : > { %v656_v47 = vpack.c.bf16 %v480_v46, %v480_v46 }
 0x1d1   : > { %537 = vst.msk [vmem:[%s225_s10 + $0x14] sm:$0xf] %vm531_vm3, %v657_v45 }
 0x1d2   : > { %536 = vst.msk [vmem:[%s225_s10 + $0x10] sm:$0xf] %vm531_vm3, %v656_v47  ;;  %v704_v48 = vpop.f32.mrb[4].mxu1 }
 0x1d3   : > { %v659_v49 = vpack.c.bf16 %v704_v48, %v704_v48  ;;  %v490_v50 = vpop.f32.mrb[5].mxu1 }
 0x1d4   : > { %v658_v51 = vpack.c.bf16 %v490_v50, %v490_v50 }
 0x1d5   : > { %539 = vst.msk [vmem:[%s225_s10 + $0x1c] sm:$0xf] %vm531_vm3, %v659_v49 }
 0x1d6   : > { %538 = vst.msk [vmem:[%s225_s10 + $0x18] sm:$0xf] %vm531_vm3, %v658_v51 }
 0x1d7 PF: > { %s14_s17 = sadd.s32 1, %s766_s17   ;;  %s904_s15 = smov %s762_s16 }
 0x1d8   : > { %p11_p5 = scmp.ge.s32.totalorder %s14_s17, 4   ;;  %s905_s16 = smov %s907_s18 }
 0x1da   :  { %13 = sbr.rel (!%p11_p5) target bundleno = 2 (0x2), region = 66 }

// kernel: hrnet3d_forward.5
= control target key start
LH: loop header
LB: loop body
LE: loop exit
PB: predicated region body
PF: predicated region fallthrough
CT: control target
= control target key end

     0   :  { %14 = vsyncpa [#allocation4], 0  ;;  %s2254_s30 = smov 0   ;;  %s2256_s10 = smov 0   ;;  %s2721_s0 = inlined_call_operand.vmem [shape: f32[2,4,512], index: 0, kind: input, shape index: {}]   ;;  %s2722_s1 = inlined_call_operand.vmem [shape: bf16[2,64,64], index: 1, kind: input, shape index: {}]   ;;  %s2723_s2 = inlined_call_operand.vmem [shape: bf16[64,512], index: 2, kind: input, shape index: {}]   ;;  %s2724_s3 = inlined_call_operand.vmem [shape: bf16[2,64,8], index: 3, kind: input, shape index: {}]   ;;  %s2725_s4 = inlined_call_operand.hbm [shape: bf16[8,512], index: 4, kind: input, shape index: {}]   ;;  %s2726_s5 = inlined_call_operand.vmem [shape: f32[16,4], index: 5, kind: input, shape index: {}]   ;;  %s2727_s6 = inlined_call_operand.vmem [shape: f32[16,1], index: 6, kind: input, shape index: {}]   ;;  %s2728_s7 = inlined_call_operand.vmem [shape: f32[64,16], index: 7, kind: input, shape index: {}]   ;;  %s2729_s8 = inlined_call_operand.vmem [shape: f32[64,1], index: 8, kind: input, shape index: {}]   ;;  %s2730_s9 = inlined_call_operand.vmem [shape: f32[2,64,512], index: 9, kind: output, shape index: {}]  }
   0x1   :  { %s2258_s11 = smov 0  }
   0x2 LB: > { %s1968_s12 = sadd.s32 4294967295, %s2199_s11   ;;  %s39_s13 = sadd.s32 1, %s2195_s10  ;;  %s2199_s11 = sphi %s2258_s11, %s20_s11   ;;  %s2195_s10 = sphi %s2256_s10, %s2740_s10   ;;  %s2191_s30 = sphi %s2254_s30, %s2739_s30  }
   0x3   : > { %p41_p0 = scmp.ge.s32.totalorder %s39_s13, 2  ;;  %p1970_p1 = scmp.ge.s32.totalorder %s2199_s11, 1 }
   0x4   : > { %p296_p2 = scmp.lt.s32.totalorder %s2199_s11, 3  ;;  %p2279_p4 = scmp.eq.s32.totalorder %s1968_s12, 0 }
   0x5   : > { %s2742_s13 = smov (%p41_p0, %s39_s13), 0  ;;  %s2201_s16 = smov [#allocation3]  }
   0x6   : > { %p2275_p3 = pnand %p1970_p1, %p296_p2  ;;  %s329_s17 = sshll.u32 %s2201_s16, 4  ;;  %s330_s17 = int_to_ptr.vmem [resolvable:$true] %s329_s17 }
   0x7   : > { %s2735_s15 = scalar_select %p2279_p4, 1, 0 }
   0x8   : > { %s2734_s14 = scalar_select %p2275_p3, 1, 0 }
   0x9   : > { %p2072_p5 = pneg %p2275_p3  ;;  %s2145_s21 = scalar_lea.hbm %s2725_s4, 256 }
   0xa   : > { %p2146_p7 = scmp.ne.s32.totalorder %s2725_s4, %s2145_s21  ;;  %p2152_p11 = scmp.lt.u32.totalorder %s2145_s21, %s2725_s4 }
   0xb   : > { %p2287_p6 = pnand %p2279_p4, %p2072_p5 }
   0xd   : > { %p2147_p8 = pneg %p2287_p6 }
   0xf   : > { %p2148_p9 = pnand %p2147_p8, %p2146_p7 }
  0x11   : > { %p2149_p10 = pneg %p2148_p9 }
  0x13   : > { %p2154_p12 = pnand %p2152_p11, %p2149_p10 }
  0x15   : > { %2157 = shalt.err (!%p2154_p12)
}
  0x16   : > { %s2158_s26 = scalar_lea.vmem %s330_s17, 256  ;;  %p2166_p2 = scmp.lt.s32.totalorder %s330_s17, %s330_s17 }
  0x17   : > { %p2159_p13 = scmp.ne.s32.totalorder %s330_s17, %s2158_s26  ;;  %p2167_p5 = scmp.lt.s32.totalorder %s2158_s26, %s2158_s26 }
  0x19   : > { %p2161_p0 = pnand %p2159_p13, %p2147_p8  ;;  %p2168_p4 = por %p2167_p5, %p2166_p2 }
  0x1b   : > { %p2162_p1 = pneg %p2161_p0 }
  0x1d   : > { %p2169_p3 = pnand %p2168_p4, %p2162_p1 }
  0x1f   : > { %2172 = shalt.err (!%p2169_p3)
}
  0x20   : > { %2075 = dma.hbm_to_vmem [thread:$0]  (!%p2287_p6), %s2725_s4, 256, %s330_s17, [#allocation4]  }
  0x21   : > { %p2737_p7 = scmp.ne.s32.totalorder %s2734_s14, 0 }
  0x22   : > { %p2738_p9 = scmp.ne.s32.totalorder (!%p2737_p7), %s2735_s15, 0 }
  0x23   : > { %389 = sbr.rel (%p2737_p7) target bundleno = 586 (0x24a), region = 56 }
  0x2a   : > { %2186 = dma.done.wait (%p2738_p9), [#allocation4], 256  }
  0x2b   : > { %2188 = vsyncadd (%p2738_p9), [#allocation4], 4294967040  ;;  %p460_p8 = scmp.lt.s32.totalorder %s2191_s30, 1  ;;  %v2202_v0 = vmov 0.0   ;;  %v2203_v1 = vmov 0   ;;  %vm540_vm0 = vcmask 1043456  }
  0x2c   : > { %613 = vmatprep.mubr.f32.mxu0 %v2202_v0  ;;  %690 = vmatprep.mubr.f32.mxu1 %v2202_v0  ;;  %v517_v6 = vld [vmem:[%s2727_s6] sm:$0xff]  ;;  %vm533_vm1 = vcmask 31744   ;;  %v518_v8 = vld [vmem:[%s2727_s6 + $0x8] sm:$0xff]  ;;  %v721_v10 = vld [vmem:[%s2729_s8 + $0x10] sm:$0xff]  ;;  %vm767_vm2 = vcmask 130048   ;;  %vm1206_vm3 = vcmask 523264  }
  0x2d   : > { %s2744_s30 = smov (!%p460_p8, %s2191_s30), 1  ;;  %2105 = vset.pattern.permute.xlu0 %v2203_v1  ;;  %2106 = vset.pattern.permute.xlu1 %v2203_v1  ;;  %v513_v7 = vld [vmem:[%s2726_s5] sm:$0xff]  ;;  %v514_v9 = vld [vmem:[%s2726_s5 + $0x8] sm:$0xff]  ;;  %v725_v12 = vld [vmem:[%s2729_s8 + $0x30] sm:$0xff]  ;;  %vm1501_vm4 = vcmask 64512  }
  0x2e   : > { %s2056_s29 = sshll.u32 %s2744_s30, 4  ;;  %521 = vperm.xlu0 %2105, %v517_v6   ;;  %s2057_s22 = sshll.u32 %s2744_s30, 5  ;;  %v723_v11 = vld [vmem:[%s2729_s8 + $0x20] sm:$0xff]  ;;  %v720_v14 = vld [vmem:[%s2729_s8 + $0x8] sm:$0xff]  ;;  %v722_v15 = vld [vmem:[%s2729_s8 + $0x18] sm:$0xff] }
  0x2f   : > { %s467_s15 = scalar_lea.vmem %s2721_s0, %s2056_s29  ;;  %s2352_s29 = scalar_lea.vmem %s2722_s1, %s2057_s22  ;;  %v719_v13 = vld [vmem:[%s2729_s8] sm:$0xff]  ;;  %v724_v16 = vld [vmem:[%s2729_s8 + $0x28] sm:$0xff]  ;;  %v726_v17 = vld [vmem:[%s2729_s8 + $0x38] sm:$0xff] }
  0x30   : > { %v515_v2 = vld [vmem:[%s467_s15] sm:$0xff]  ;;  %v516_v3 = vld [vmem:[%s467_s15 + $0x8] sm:$0xff]  ;;  %s2359_s15 = scalar_lea.vmem %s2724_s3, %s2057_s22  ;;  %729 = vperm.xlu1 %2106, %v719_v13   ;;  %v713_v60 = vld [vmem:[%s2728_s7 + $0x10] sm:$0xff] }
  0x31   : > { %v531_v4 = vcombine.high %v515_v2, %v515_v2  ;;  %v532_v5 = vcombine.high %v516_v3, %v516_v3  ;;  %v2111_v48 = vld [vmem:[%s2723_s2 + $0x4] ss:$16 sps:$4 sm:$0xff]   ;;  %v2114_v49 = vld [vmem:[%s2723_s2 + $0xc] ss:$16 sps:$4 sm:$0xff]   ;;  %v2109_v51 = vld [vmem:[%s2723_s2] ss:$16 sps:$4 sm:$0xff]  }
  0x32   : > { %526 = vperm.xlu0 %2105, %v518_v8   ;;  %v711_v50 = vld [vmem:[%s2728_s7] sm:$0xff]  ;;  %v2112_v52 = vld [vmem:[%s2723_s2 + $0x8] ss:$16 sps:$4 sm:$0xff]   ;;  %v2120_v54 = vld [vmem:[%s2723_s2 + $0x2c] ss:$16 sps:$4 sm:$0xff]  }
  0x33   : > { %1984 = vmatprep.subr.msk.mxu0 %vm540_vm0, %v531_v4  ;;  %1988 = vmatprep.subr.msk.mxu1 %vm540_vm0, %v532_v5  ;;  %v2117_v53 = vld [vmem:[%s2723_s2 + $0x24] ss:$16 sps:$4 sm:$0xff]   ;;  %v712_v55 = vld [vmem:[%s2728_s7 + $0x8] sm:$0xff]  ;;  %v2115_v56 = vld [vmem:[%s2723_s2 + $0x20] ss:$16 sps:$4 sm:$0xff]  }
  0x34   : > { %1985 = vmatpush1.msk.msra.mxu0 %vm540_vm0, %v515_v2  ;;  %1989 = vmatpush1.msk.msra.mxu1 %vm540_vm0, %v516_v3  ;;  %v2118_v57 = vld [vmem:[%s2723_s2 + $0x28] ss:$16 sps:$4 sm:$0xff]   ;;  %v2123_v58 = vld [vmem:[%s2723_s2 + $0x44] ss:$16 sps:$4 sm:$0xff]   ;;  %v2126_v59 = vld [vmem:[%s2723_s2 + $0x4c] ss:$16 sps:$4 sm:$0xff]  }
  0x35   : > { %1986 = vmatmul.mubr.msk.f32.vlgmr.msra.gmra.mrb[0].mxu0 %vm533_vm1, %v513_v7  ;;  %1990 = vmatmul.mubr.msk.f32.vlgmr.msra.gmra.mrb[0].mxu1 %vm533_vm1, %v513_v7  ;;  %v2121_v61 = vld [vmem:[%s2723_s2 + $0x40] ss:$16 sps:$4 sm:$0xff]   ;;  %v2124_v62 = vld [vmem:[%s2723_s2 + $0x48] ss:$16 sps:$4 sm:$0xff]   ;;  %v2129_v63 = vld [vmem:[%s2723_s2 + $0x64] ss:$16 sps:$4 sm:$0xff]  }
  0x36   : > { %619 = vmatprep.mubr.f32.mxu0 %v2202_v0  ;;  %696 = vmatprep.mubr.f32.mxu1 %v2202_v0  ;;  %v2132_v2 = vld [vmem:[%s2723_s2 + $0x6c] ss:$16 sps:$4 sm:$0xff]   ;;  %v1469_v3 = vld [vmem:[#allocation3] sm:$0xff]  ;;  %v2130_v7 = vld [vmem:[%s2723_s2 + $0x68] ss:$16 sps:$4 sm:$0xff]  }
  0x37   : > { %739 = vperm.xlu0 %2105, %v721_v10   ;;  %734 = vperm.xlu1 %2106, %v720_v14   ;;  %v1470_v4 = vld [vmem:[#allocation3 + $0x8] sm:$0xff]  ;;  %v714_v5 = vld [vmem:[%s2728_s7 + $0x18] sm:$0xff]  ;;  %v2127_v6 = vld [vmem:[%s2723_s2 + $0x60] ss:$16 sps:$4 sm:$0xff]   ;;  %v2041_v8 = vcombine.high %v1469_v3, %v1469_v3  ;;  %v2040_v14 = vcombine.low %v1469_v3, %v1469_v3 }
  0x38   : > { %v715_v10 = vld [vmem:[%s2728_s7 + $0x20] sm:$0xff]  ;;  %v718_v13 = vld [vmem:[%s2728_s7 + $0x38] sm:$0xff] }
  0x39   : > { %1987 = vmatmul.mubr.msk.f32.gmra.mrb[2].mxu0 %vm533_vm1, %v514_v9  ;;  %1991 = vmatmul.mubr.msk.f32.gmra.mrb[2].mxu1 %vm533_vm1, %v514_v9  ;;  %v2043_v9 = vcombine.high %v1470_v4, %v1470_v4 }
  0x3a   : > { %856 = vmatprep.mubr.f32.mxu0 %v2202_v0  ;;  %969 = vmatprep.mubr.f32.mxu1 %v2202_v0 }
  0x3b   : > { %749 = vperm.xlu0 %2105, %v723_v11   ;;  %744 = vperm.xlu1 %2106, %v722_v15   ;;  %v716_v11 = vld [vmem:[%s2728_s7 + $0x28] sm:$0xff]  ;;  %v2042_v15 = vcombine.low %v1470_v4, %v1470_v4 }
  0x3f   : > { %759 = vperm.xlu0 %2105, %v725_v12   ;;  %754 = vperm.xlu1 %2106, %v724_v16   ;;  %v717_v12 = vld [vmem:[%s2728_s7 + $0x30] sm:$0xff]  ;;  %v2133_v16 = vld [vmem:[%s2352_s29] sm:$0xff]  }
  0x43   : > { %764 = vperm.xlu1 %2106, %v726_v17   ;;  %v1522_v17 = vsel %vm540_vm0, %v2042_v15, 0 }
  0xad   : > { %v522_v18 = vpop.permute.xlu0 %521 }
  0xb1   : > { %v527_v23 = vpop.permute.xlu0 %526 }
 0x108   : > { %v615_v19 = vpop.f32.mrb[0].mxu0  ;;  %v692_v20 = vpop.f32.mrb[0].mxu1 }
 0x109   : > { %v617_v21 = vpop.f32.mrb[1].mxu0  ;;  %v694_v22 = vpop.f32.mrb[1].mxu1  ;;  %v616_v24 = vadd.f32 %v615_v19, %v522_v18  ;;  %v693_v25 = vadd.f32 %v692_v20, %v522_v18  ;;  %v2139_v19 = vld [vmem:[%s2352_s29 + $0x10] sm:$0xff]   ;;  %v2140_v20 = vld [vmem:[%s2352_s29 + $0x18] sm:$0xff]  }
 0x10a   : > { %v618_v26 = vadd.f32 %v617_v21, %v522_v18  ;;  %v695_v27 = vadd.f32 %v694_v22, %v522_v18  ;;  %v2138_v18 = vld [vmem:[%s2352_s29 + $0x8] sm:$0xff]   ;;  %v2141_v21 = vld [vmem:[%s2359_s15] sm:$0xff]   ;;  %s2059_s29 = sshll.u32 %s2744_s30, 8 }
 0x10b   : > { %v703_v36 = vmax.f32 %v616_v24, 0.0  ;;  %v705_v37 = vmax.f32 %v693_v25, 0.0  ;;  %v2142_v22 = vld [vmem:[%s2359_s15 + $0x8] sm:$0xff]   ;;  %v2144_v24 = vld [vmem:[%s2359_s15 + $0x18] sm:$0xff]   ;;  %s2646_s19 = scalar_lea.vmem %s2730_s9, %s2059_s29 }
 0x10c   : > { %v621_v28 = vpop.f32.mrb[2].mxu0  ;;  %v698_v29 = vpop.f32.mrb[2].mxu1  ;;  %v704_v40 = vmax.f32 %v618_v26, 0.0  ;;  %v706_v41 = vmax.f32 %v695_v27, 0.0 }
 0x10d   : > { %v622_v30 = vadd.f32 %v621_v28, %v527_v23  ;;  %v699_v31 = vadd.f32 %v698_v29, %v527_v23  ;;  %v623_v32 = vpop.f32.mrb[3].mxu0  ;;  %v700_v33 = vpop.f32.mrb[3].mxu1 }
 0x10e   : > { %v624_v34 = vadd.f32 %v623_v32, %v527_v23  ;;  %v701_v35 = vadd.f32 %v700_v33, %v527_v23  ;;  %v2143_v23 = vld [vmem:[%s2359_s15 + $0x10] sm:$0xff]  }
 0x10f   : > { %v707_v38 = vmax.f32 %v622_v30, 0.0  ;;  %v709_v39 = vmax.f32 %v699_v31, 0.0 }
 0x110   : > { %v708_v42 = vmax.f32 %v624_v34, 0.0  ;;  %v710_v43 = vmax.f32 %v701_v35, 0.0 }
 0x111   : > { %v2062_v44 = vpack.c.bf16 %v707_v38, %v703_v36  ;;  %v2066_v45 = vpack.c.bf16 %v709_v39, %v705_v37 }
 0x112   : > { %v2060_v46 = vpack.c.bf16 %v708_v42, %v704_v40  ;;  %v2064_v47 = vpack.c.bf16 %v710_v43, %v706_v41 }
 0x114   : > { %2061 = vmatprep.subr.bf16.mxu0 %v2060_v46  ;;  %2065 = vmatprep.subr.bf16.mxu1 %v2064_v47 }
 0x115   : > { %2063 = vmatpush1.bf16.msra.mxu0 %v2062_v44  ;;  %2067 = vmatpush1.bf16.msra.mxu1 %v2066_v45 }
 0x116   : > { %1219 = vmatprep.subr.bf16.mxu0 %v2111_v48  ;;  %1292 = vmatprep.subr.bf16.mxu1 %v2114_v49  ;;  %v730_v48 = vpop.permute.xlu1 %729 }
 0x118   : > { %1992 = vmatmul.mubr.msk.f32.vlgmr.msra.gmra.mrb[4].mxu0 %vm767_vm2, %v711_v50  ;;  %2000 = vmatmul.mubr.msk.f32.vlgmr.msra.gmra.mrb[4].mxu1 %vm767_vm2, %v711_v50 }
 0x119   : > { %862 = vmatprep.mubr.f32.mxu0 %v2202_v0  ;;  %975 = vmatprep.mubr.f32.mxu1 %v2202_v0 }
 0x11a   : > { %1220 = vmatpush1.bf16.msra.mxu0 %v2109_v51  ;;  %1293 = vmatpush1.bf16.msra.mxu1 %v2112_v52 }
 0x11b   : > { %1221 = vmatprep.subr.bf16.mxu0 %v2117_v53  ;;  %1294 = vmatprep.subr.bf16.mxu1 %v2120_v54 }
 0x11c   : > { %1993 = vmatmul.mubr.msk.f32.gmra.mrb[6].mxu0 %vm767_vm2, %v712_v55  ;;  %2001 = vmatmul.mubr.msk.f32.gmra.mrb[6].mxu1 %vm767_vm2, %v712_v55 }
 0x11d   : > { %868 = vmatprep.mubr.f32.mxu0 %v2202_v0  ;;  %981 = vmatprep.mubr.f32.mxu1 %v2202_v0 }
 0x11e   : > { %1222 = vmatpush1.bf16.msra.mxu0 %v2115_v56  ;;  %1295 = vmatpush1.bf16.msra.mxu1 %v2118_v57  ;;  %v735_v57 = vpop.permute.xlu1 %734 }
 0x11f   : > { %1223 = vmatprep.subr.bf16.mxu0 %v2123_v58  ;;  %1296 = vmatprep.subr.bf16.mxu1 %v2126_v59 }
 0x120   : > { %1994 = vmatmul.mubr.msk.f32.gmra.mrb[8].mxu0 %vm767_vm2, %v713_v60  ;;  %2002 = vmatmul.mubr.msk.f32.gmra.mrb[8].mxu1 %vm767_vm2, %v713_v60 }
 0x121   : > { %874 = vmatprep.mubr.f32.mxu0 %v2202_v0  ;;  %987 = vmatprep.mubr.f32.mxu1 %v2202_v0 }
 0x122   : > { %1224 = vmatpush1.bf16.msra.mxu0 %v2121_v61  ;;  %1297 = vmatpush1.bf16.msra.mxu1 %v2124_v62 }
 0x123   : > { %1225 = vmatprep.subr.bf16.mxu0 %v2129_v63  ;;  %1298 = vmatprep.subr.bf16.mxu1 %v2132_v2 }
 0x124   : > { %1995 = vmatmul.mubr.msk.f32.gmra.mrb[10].mxu0 %vm767_vm2, %v714_v5  ;;  %2003 = vmatmul.mubr.msk.f32.gmra.mrb[10].mxu1 %vm767_vm2, %v714_v5 }
 0x125   : > { %880 = vmatprep.mubr.f32.mxu0 %v2202_v0  ;;  %993 = vmatprep.mubr.f32.mxu1 %v2202_v0 }
 0x126   : > { %1226 = vmatpush1.bf16.msra.mxu0 %v2127_v6  ;;  %1299 = vmatpush1.bf16.msra.mxu1 %v2130_v7 }
 0x127   : > { %2044 = vmatprep.subr.msk.bf16.mxu0 %vm540_vm0, %v2041_v8  ;;  %2049 = vmatprep.subr.msk.bf16.mxu1 %vm540_vm0, %v2043_v9 }
 0x128   : > { %1996 = vmatmul.mubr.msk.f32.gmra.mrb[12].mxu0 %vm767_vm2, %v715_v10  ;;  %2004 = vmatmul.mubr.msk.f32.gmra.mrb[12].mxu1 %vm767_vm2, %v715_v10 }
 0x129   : > { %886 = vmatprep.mubr.f32.mxu0 %v2202_v0  ;;  %999 = vmatprep.mubr.f32.mxu1 %v2202_v0 }
 0x12c   : > { %1997 = vmatmul.mubr.msk.f32.gmra.mrb[14].mxu0 %vm767_vm2, %v716_v11  ;;  %2005 = vmatmul.mubr.msk.f32.gmra.mrb[14].mxu1 %vm767_vm2, %v716_v11 }
 0x12d   : > { %892 = vmatprep.mubr.f32.mxu0 %v2202_v0  ;;  %1005 = vmatprep.mubr.f32.mxu1 %v2202_v0 }
 0x130   : > { %1998 = vmatmul.mubr.msk.f32.gmra.mrb[16].mxu0 %vm767_vm2, %v717_v12  ;;  %2006 = vmatmul.mubr.msk.f32.gmra.mrb[16].mxu1 %vm767_vm2, %v717_v12 }
 0x131   : > { %898 = vmatprep.mubr.f32.mxu0 %v2202_v0  ;;  %1011 = vmatprep.mubr.f32.mxu1 %v2202_v0  ;;  %v1516_v0 = vsel %vm540_vm0, %v2040_v14, 0 }
 0x134   : > { %1999 = vmatmul.mubr.msk.f32.gmra.mrb[18].mxu0 %vm767_vm2, %v718_v13  ;;  %2007 = vmatmul.mubr.msk.f32.gmra.mrb[18].mxu1 %vm767_vm2, %v718_v13 }
 0x135   : > { %1251 = vmatprep.mubr.bf16.mxu0 %v2203_v1  ;;  %1324 = vmatprep.mubr.bf16.mxu1 %v2203_v1 }
 0x138   : > { %2028 = vmatmul.mubr.msk.bf16.vlgmr.msra.gmra.mrb[20].mxu0 %vm1206_vm3, %v2133_v16  ;;  %2032 = vmatmul.mubr.msk.bf16.vlgmr.msra.gmra.mrb[20].mxu1 %vm1206_vm3, %v2133_v16 }
 0x139   : > { %1528 = vmatpush1.bf16.msra.mxu0 %v1516_v0  ;;  %1601 = vmatpush1.bf16.msra.mxu1 %v1522_v17 }
 0x13a   : > { %1261 = vmatprep.mubr.bf16.mxu0 %v2203_v1  ;;  %1334 = vmatprep.mubr.bf16.mxu1 %v2203_v1 }
 0x140   : > { %2029 = vmatmul.mubr.msk.bf16.gmra.mrb[24].mxu0 %vm1206_vm3, %v2138_v18  ;;  %2033 = vmatmul.mubr.msk.bf16.gmra.mrb[24].mxu1 %vm1206_vm3, %v2138_v18 }
 0x141   : > { %1271 = vmatprep.mubr.bf16.mxu0 %v2203_v1  ;;  %1344 = vmatprep.mubr.bf16.mxu1 %v2203_v1 }
 0x148   : > { %2030 = vmatmul.mubr.msk.bf16.gmra.mrb[28].mxu0 %vm1206_vm3, %v2139_v19  ;;  %2034 = vmatmul.mubr.msk.bf16.gmra.mrb[28].mxu1 %vm1206_vm3, %v2139_v19  ;;  %v740_v19 = vpop.permute.xlu0 %739 }
 0x149   : > { %1281 = vmatprep.mubr.bf16.mxu0 %v2203_v1  ;;  %1354 = vmatprep.mubr.bf16.mxu1 %v2203_v1 }
 0x150   : > { %2031 = vmatmul.mubr.msk.bf16.gmra.mrb[32].mxu0 %vm1206_vm3, %v2140_v20  ;;  %2035 = vmatmul.mubr.msk.bf16.gmra.mrb[32].mxu1 %vm1206_vm3, %v2140_v20  ;;  %v745_v20 = vpop.permute.xlu1 %744 }
 0x151   : > { %1559 = vmatprep.mubr.bf16.mxu0 %v2203_v1  ;;  %1632 = vmatprep.mubr.bf16.mxu1 %v2203_v1 }
 0x158   : > { %2045 = vmatmul.mubr.msk.bf16.vlgmr.msra.gmra.mrb[36].mxu0 %vm1501_vm4, %v2141_v21  ;;  %2050 = vmatmul.mubr.msk.bf16.vlgmr.msra.gmra.mrb[36].mxu1 %vm1501_vm4, %v2141_v21 }
 0x159   : > { %1569 = vmatprep.mubr.bf16.mxu0 %v2203_v1  ;;  %1642 = vmatprep.mubr.bf16.mxu1 %v2203_v1 }
 0x160   : > { %2046 = vmatmul.mubr.msk.bf16.gmra.mrb[40].mxu0 %vm1501_vm4, %v2142_v22  ;;  %2051 = vmatmul.mubr.msk.bf16.gmra.mrb[40].mxu1 %vm1501_vm4, %v2142_v22 }
 0x161   : > { %1579 = vmatprep.mubr.bf16.mxu0 %v2203_v1  ;;  %1652 = vmatprep.mubr.bf16.mxu1 %v2203_v1 }
 0x168   : > { %2047 = vmatmul.mubr.msk.bf16.gmra.mrb[44].mxu0 %vm1501_vm4, %v2143_v23  ;;  %2052 = vmatmul.mubr.msk.bf16.gmra.mrb[44].mxu1 %vm1501_vm4, %v2143_v23 }
 0x169   : > { %1589 = vmatprep.mubr.bf16.mxu0 %v2203_v1  ;;  %1662 = vmatprep.mubr.bf16.mxu1 %v2203_v1 }
 0x170   : > { %2048 = vmatmul.mubr.msk.bf16.gmra.mrb[48].mxu0 %vm1501_vm4, %v2144_v24  ;;  %2053 = vmatmul.mubr.msk.bf16.gmra.mrb[48].mxu1 %vm1501_vm4, %v2144_v24 }
 0x1eb   : > { %v858_v25 = vpop.f32.mrb[4].mxu0  ;;  %v971_v26 = vpop.f32.mrb[4].mxu1 }
 0x1ec   : > { %v860_v27 = vpop.f32.mrb[5].mxu0  ;;  %v973_v28 = vpop.f32.mrb[5].mxu1  ;;  %v859_v58 = vadd.f32 %v858_v25, %v730_v48  ;;  %v972_v59 = vadd.f32 %v971_v26, %v730_v48 }
 0x1ed   : > { %v861_v60 = vadd.f32 %v860_v27, %v730_v48  ;;  %v974_v61 = vadd.f32 %v973_v28, %v730_v48 }
 0x1ef   : > { %v864_v29 = vpop.f32.mrb[6].mxu0  ;;  %v977_v30 = vpop.f32.mrb[6].mxu1 }
 0x1f0   : > { %v866_v31 = vpop.f32.mrb[7].mxu0  ;;  %v979_v32 = vpop.f32.mrb[7].mxu1  ;;  %v865_v6 = vadd.f32 %v864_v29, %v735_v57  ;;  %v978_v7 = vadd.f32 %v977_v30, %v735_v57 }
 0x1f1   : > { %v867_v12 = vadd.f32 %v866_v31, %v735_v57  ;;  %v980_v13 = vadd.f32 %v979_v32, %v735_v57 }
 0x1f3   : > { %v870_v33 = vpop.f32.mrb[8].mxu0  ;;  %v983_v34 = vpop.f32.mrb[8].mxu1 }
 0x1f4   : > { %v872_v35 = vpop.f32.mrb[9].mxu0  ;;  %v985_v36 = vpop.f32.mrb[9].mxu1  ;;  %v871_v21 = vadd.f32 %v870_v33, %v740_v19  ;;  %v984_v22 = vadd.f32 %v983_v34, %v740_v19 }
 0x1f5   : > { %v873_v23 = vadd.f32 %v872_v35, %v740_v19  ;;  %v986_v24 = vadd.f32 %v985_v36, %v740_v19 }
 0x1f7   : > { %v876_v37 = vpop.f32.mrb[10].mxu0  ;;  %v989_v38 = vpop.f32.mrb[10].mxu1 }
 0x1f8   : > { %v878_v1 = vpop.f32.mrb[11].mxu0  ;;  %v991_v39 = vpop.f32.mrb[11].mxu1  ;;  %v877_v31 = vadd.f32 %v876_v37, %v745_v20  ;;  %v990_v32 = vadd.f32 %v989_v38, %v745_v20 }
 0x1f9   : > { %v879_v33 = vadd.f32 %v878_v1, %v745_v20  ;;  %v992_v34 = vadd.f32 %v991_v39, %v745_v20  ;;  %v750_v37 = vpop.permute.xlu0 %749  ;;  %v755_v38 = vpop.permute.xlu1 %754 }
 0x1fb   : > { %v2530_v40 = vpop.f32.mrb[12].mxu0  ;;  %v2532_v41 = vpop.f32.mrb[12].mxu1 }
 0x1fc   : > { %v2534_v42 = vpop.f32.mrb[13].mxu0  ;;  %v2536_v43 = vpop.f32.mrb[13].mxu1 }
 0x1fd   : > { %v998_v1 = vadd.f32 %v2536_v43, %v750_v37 }
 0x1ff   : > { %v2538_v44 = vpop.f32.mrb[14].mxu0  ;;  %v2540_v45 = vpop.f32.mrb[14].mxu1 }
 0x200   : > { %v2542_v46 = vpop.f32.mrb[15].mxu0  ;;  %v2544_v47 = vpop.f32.mrb[15].mxu1 }
 0x201   : > { %v891_v43 = vadd.f32 %v2542_v46, %v755_v38  ;;  %v1004_v20 = vadd.f32 %v2544_v47, %v755_v38 }
 0x203   : > { %v2546_v49 = vpop.f32.mrb[16].mxu0  ;;  %v2548_v50 = vpop.f32.mrb[16].mxu1 }
 0x204   : > { %v2550_v51 = vpop.f32.mrb[17].mxu0  ;;  %v2552_v52 = vpop.f32.mrb[17].mxu1 }
 0x207   : > { %v2554_v53 = vpop.f32.mrb[18].mxu0  ;;  %v2556_v54 = vpop.f32.mrb[18].mxu1 }
 0x208   : > { %v2558_v55 = vpop.f32.mrb[19].mxu0  ;;  %v2560_v56 = vpop.f32.mrb[19].mxu1 }
 0x20b   : > { %v1253_v62 = vpop.f32.mrb[20].mxu0  ;;  %v1326_v63 = vpop.f32.mrb[20].mxu1 }
 0x20c   : > { %v2562_v2 = vadd.f32 %v1253_v62, %v859_v58  ;;  %v2564_v3 = vadd.f32 %v1326_v63, %v972_v59  ;;  %v1255_v4 = vpop.f32.mrb[21].mxu0  ;;  %v1328_v5 = vpop.f32.mrb[21].mxu1 }
 0x20d   : > { %v2566_v8 = vadd.f32 %v1255_v4, %v861_v60  ;;  %v2568_v9 = vadd.f32 %v1328_v5, %v974_v61  ;;  %v1257_v10 = vpop.f32.mrb[22].mxu0  ;;  %v1330_v11 = vpop.f32.mrb[22].mxu1  ;;  %v883_v4 = vadd.f32 %v2530_v40, %v750_v37  ;;  %v996_v5 = vadd.f32 %v2532_v41, %v750_v37 }
 0x20e   : > { %v2570_v14 = vadd.f32 %v1257_v10, %v865_v6  ;;  %v2572_v15 = vadd.f32 %v1330_v11, %v978_v7  ;;  %v1259_v16 = vpop.f32.mrb[23].mxu0  ;;  %v1332_v0 = vpop.f32.mrb[23].mxu1  ;;  %v885_v6 = vadd.f32 %v2534_v42, %v750_v37 }
 0x20f   : > { %v2574_v17 = vadd.f32 %v1259_v16, %v867_v12  ;;  %v2576_v18 = vadd.f32 %v1332_v0, %v980_v13  ;;  %v889_v16 = vadd.f32 %v2538_v44, %v755_v38  ;;  %v1002_v0 = vadd.f32 %v2540_v45, %v755_v38  ;;  %v760_v45 = vpop.permute.xlu0 %759 }
 0x210   : > { %v897_v46 = vadd.f32 %v2550_v51, %v760_v45  ;;  %v1010_v47 = vadd.f32 %v2552_v52, %v760_v45 }
 0x213   : > { %v1263_v25 = vpop.f32.mrb[24].mxu0  ;;  %v1336_v26 = vpop.f32.mrb[24].mxu1 }
 0x214   : > { %v2578_v27 = vadd.f32 %v1263_v25, %v871_v21  ;;  %v2580_v28 = vadd.f32 %v1336_v26, %v984_v22  ;;  %v1265_v29 = vpop.f32.mrb[25].mxu0  ;;  %v1338_v30 = vpop.f32.mrb[25].mxu1 }
 0x215   : > { %v2582_v48 = vadd.f32 %v1265_v29, %v873_v23  ;;  %v2584_v57 = vadd.f32 %v1338_v30, %v986_v24  ;;  %v1267_v58 = vpop.f32.mrb[26].mxu0  ;;  %v1340_v59 = vpop.f32.mrb[26].mxu1  ;;  %v895_v29 = vadd.f32 %v2546_v49, %v760_v45  ;;  %v1008_v30 = vadd.f32 %v2548_v50, %v760_v45 }
 0x216   : > { %v2586_v35 = vadd.f32 %v1267_v58, %v877_v31  ;;  %v2588_v36 = vadd.f32 %v1340_v59, %v990_v32  ;;  %v1269_v60 = vpop.f32.mrb[27].mxu0  ;;  %v1342_v61 = vpop.f32.mrb[27].mxu1 }
 0x217   : > { %v2590_v62 = vadd.f32 %v1269_v60, %v879_v33  ;;  %v2592_v63 = vadd.f32 %v1342_v61, %v992_v34  ;;  %v765_v26 = vpop.permute.xlu1 %764 }
 0x218   : > { %v901_v60 = vadd.f32 %v2554_v53, %v765_v26  ;;  %v1014_v61 = vadd.f32 %v2556_v54, %v765_v26  ;;  %v903_v52 = vadd.f32 %v2558_v55, %v765_v26  ;;  %v1016_v38 = vadd.f32 %v2560_v56, %v765_v26 }
 0x21b   : > { %v1273_v39 = vpop.f32.mrb[28].mxu0  ;;  %v1346_v7 = vpop.f32.mrb[28].mxu1 }
 0x21c   : > { %v2598_v10 = vadd.f32 %v1273_v39, %v883_v4  ;;  %v2600_v11 = vadd.f32 %v1346_v7, %v996_v5  ;;  %v1275_v12 = vpop.f32.mrb[29].mxu0  ;;  %v1348_v13 = vpop.f32.mrb[29].mxu1 }
 0x21d   : > { %v2604_v19 = vadd.f32 %v1275_v12, %v885_v6  ;;  %v2606_v40 = vadd.f32 %v1348_v13, %v998_v1  ;;  %v1277_v41 = vpop.f32.mrb[30].mxu0  ;;  %v1350_v42 = vpop.f32.mrb[30].mxu1 }
 0x21e   : > { %v2610_v21 = vadd.f32 %v1277_v41, %v889_v16  ;;  %v2612_v22 = vadd.f32 %v1350_v42, %v1002_v0  ;;  %v1279_v23 = vpop.f32.mrb[31].mxu0  ;;  %v1352_v24 = vpop.f32.mrb[31].mxu1 }
 0x21f   : > { %v2614_v25 = vadd.f32 %v1279_v23, %v891_v43  ;;  %v2616_v44 = vadd.f32 %v1352_v24, %v1004_v20 }
 0x223   : > { %v1283_v31 = vpop.f32.mrb[32].mxu0  ;;  %v1356_v32 = vpop.f32.mrb[32].mxu1 }
 0x224   : > { %v2622_v58 = vadd.f32 %v1283_v31, %v895_v29  ;;  %v2624_v59 = vadd.f32 %v1356_v32, %v1008_v30  ;;  %v1285_v33 = vpop.f32.mrb[33].mxu0  ;;  %v1358_v34 = vpop.f32.mrb[33].mxu1 }
 0x225   : > { %v2628_v49 = vadd.f32 %v1285_v33, %v897_v46  ;;  %v2630_v50 = vadd.f32 %v1358_v34, %v1010_v47  ;;  %v1287_v51 = vpop.f32.mrb[34].mxu0  ;;  %v1360_v37 = vpop.f32.mrb[34].mxu1 }
 0x226   : > { %v2634_v4 = vadd.f32 %v1287_v51, %v901_v60  ;;  %v2636_v5 = vadd.f32 %v1360_v37, %v1014_v61  ;;  %v1289_v6 = vpop.f32.mrb[35].mxu0  ;;  %v1362_v1 = vpop.f32.mrb[35].mxu1 }
 0x227   : > { %v2638_v39 = vadd.f32 %v1289_v6, %v903_v52  ;;  %v2640_v53 = vadd.f32 %v1362_v1, %v1016_v38 }
 0x22b   : > { %v1561_v54 = vpop.f32.mrb[36].mxu0  ;;  %v1634_v55 = vpop.f32.mrb[36].mxu1 }
 0x22c   : > { %v1673_v56 = vadd.f32 %v1561_v54, %v2562_v2  ;;  %v1675_v7 = vadd.f32 %v1634_v55, %v2564_v3  ;;  %v1563_v12 = vpop.f32.mrb[37].mxu0  ;;  %v1636_v13 = vpop.f32.mrb[37].mxu1 }
 0x22d   : > { %v1674_v16 = vadd.f32 %v1563_v12, %v2566_v8  ;;  %v1676_v0 = vadd.f32 %v1636_v13, %v2568_v9  ;;  %v1565_v41 = vpop.f32.mrb[38].mxu0  ;;  %v1638_v42 = vpop.f32.mrb[38].mxu1 }
 0x22e   : > { %1772 = vst [vmem:[%s2646_s19] sm:$0xff] %v1673_v56  ;;  %1774 = vst [vmem:[%s2646_s19 + $0x10] sm:$0xff] %v1675_v7  ;;  %v1677_v43 = vadd.f32 %v1565_v41, %v2570_v14  ;;  %v1679_v2 = vadd.f32 %v1638_v42, %v2572_v15  ;;  %v1567_v20 = vpop.f32.mrb[39].mxu0  ;;  %v1640_v3 = vpop.f32.mrb[39].mxu1 }
 0x22f   : > { %1773 = vst [vmem:[%s2646_s19 + $0x8] sm:$0xff] %v1674_v16  ;;  %1775 = vst [vmem:[%s2646_s19 + $0x18] sm:$0xff] %v1676_v0  ;;  %v1678_v23 = vadd.f32 %v1567_v20, %v2574_v17  ;;  %v1680_v8 = vadd.f32 %v1640_v3, %v2576_v18 }
 0x230   : > { %1776 = vst [vmem:[%s2646_s19 + $0x20] sm:$0xff] %v1677_v43  ;;  %1778 = vst [vmem:[%s2646_s19 + $0x30] sm:$0xff] %v1679_v2 }
 0x231   : > { %1777 = vst [vmem:[%s2646_s19 + $0x28] sm:$0xff] %v1678_v23  ;;  %1779 = vst [vmem:[%s2646_s19 + $0x38] sm:$0xff] %v1680_v8 }
 0x233   : > { %v1571_v9 = vpop.f32.mrb[40].mxu0  ;;  %v1644_v24 = vpop.f32.mrb[40].mxu1 }
 0x234   : > { %v1681_v14 = vadd.f32 %v1571_v9, %v2578_v27  ;;  %v1683_v15 = vadd.f32 %v1644_v24, %v2580_v28  ;;  %v1573_v45 = vpop.f32.mrb[41].mxu0  ;;  %v1646_v26 = vpop.f32.mrb[41].mxu1 }
 0x235   : > { %v1682_v17 = vadd.f32 %v1573_v45, %v2582_v48  ;;  %v1684_v18 = vadd.f32 %v1646_v26, %v2584_v57  ;;  %v1575_v29 = vpop.f32.mrb[42].mxu0  ;;  %v1648_v30 = vpop.f32.mrb[42].mxu1 }
 0x236   : > { %1780 = vst [vmem:[%s2646_s19 + $0x40] sm:$0xff] %v1681_v14  ;;  %1782 = vst [vmem:[%s2646_s19 + $0x50] sm:$0xff] %v1683_v15  ;;  %v1685_v46 = vadd.f32 %v1575_v29, %v2586_v35  ;;  %v1687_v27 = vadd.f32 %v1648_v30, %v2588_v36  ;;  %v1577_v47 = vpop.f32.mrb[43].mxu0  ;;  %v1650_v28 = vpop.f32.mrb[43].mxu1 }
 0x237   : > { %1781 = vst [vmem:[%s2646_s19 + $0x48] sm:$0xff] %v1682_v17  ;;  %1783 = vst [vmem:[%s2646_s19 + $0x58] sm:$0xff] %v1684_v18  ;;  %v1686_v31 = vadd.f32 %v1577_v47, %v2590_v62  ;;  %v1688_v48 = vadd.f32 %v1650_v28, %v2592_v63 }
 0x238   : > { %1784 = vst [vmem:[%s2646_s19 + $0x60] sm:$0xff] %v1685_v46  ;;  %1786 = vst [vmem:[%s2646_s19 + $0x70] sm:$0xff] %v1687_v27 }
 0x239   : > { %1785 = vst [vmem:[%s2646_s19 + $0x68] sm:$0xff] %v1686_v31  ;;  %1787 = vst [vmem:[%s2646_s19 + $0x78] sm:$0xff] %v1688_v48 }
 0x23b   : > { %v1581_v57 = vpop.f32.mrb[44].mxu0  ;;  %v1654_v32 = vpop.f32.mrb[44].mxu1 }
 0x23c   : > { %v1689_v35 = vadd.f32 %v1581_v57, %v2598_v10  ;;  %v1691_v36 = vadd.f32 %v1654_v32, %v2600_v11  ;;  %v1583_v33 = vpop.f32.mrb[45].mxu0  ;;  %v1656_v34 = vpop.f32.mrb[45].mxu1 }
 0x23d   : > { %v1690_v62 = vadd.f32 %v1583_v33, %v2604_v19  ;;  %v1692_v63 = vadd.f32 %v1656_v34, %v2606_v40  ;;  %v1585_v60 = vpop.f32.mrb[46].mxu0  ;;  %v1658_v61 = vpop.f32.mrb[46].mxu1 }
 0x23e   : > { %1788 = vst [vmem:[%s2646_s19 + $0x80] sm:$0xff] %v1689_v35  ;;  %1790 = vst [vmem:[%s2646_s19 + $0x90] sm:$0xff] %v1691_v36  ;;  %v1693_v51 = vadd.f32 %v1585_v60, %v2610_v21  ;;  %v1695_v10 = vadd.f32 %v1658_v61, %v2612_v22  ;;  %v1587_v37 = vpop.f32.mrb[47].mxu0  ;;  %v1660_v11 = vpop.f32.mrb[47].mxu1 }
 0x23f   : > { %1789 = vst [vmem:[%s2646_s19 + $0x88] sm:$0xff] %v1690_v62  ;;  %1791 = vst [vmem:[%s2646_s19 + $0x98] sm:$0xff] %v1692_v63  ;;  %v1694_v52 = vadd.f32 %v1587_v37, %v2614_v25  ;;  %v1696_v19 = vadd.f32 %v1660_v11, %v2616_v44 }
 0x240   : > { %1792 = vst [vmem:[%s2646_s19 + $0xa0] sm:$0xff] %v1693_v51  ;;  %1794 = vst [vmem:[%s2646_s19 + $0xb0] sm:$0xff] %v1695_v10 }
 0x241   : > { %1793 = vst [vmem:[%s2646_s19 + $0xa8] sm:$0xff] %v1694_v52  ;;  %1795 = vst [vmem:[%s2646_s19 + $0xb8] sm:$0xff] %v1696_v19 }
 0x243   : > { %v1591_v40 = vpop.f32.mrb[48].mxu0  ;;  %v1664_v38 = vpop.f32.mrb[48].mxu1 }
 0x244   : > { %v1697_v21 = vadd.f32 %v1591_v40, %v2622_v58  ;;  %v1699_v22 = vadd.f32 %v1664_v38, %v2624_v59  ;;  %v1593_v6 = vpop.f32.mrb[49].mxu0  ;;  %v1666_v1 = vpop.f32.mrb[49].mxu1 }
 0x245   : > { %v1698_v25 = vadd.f32 %v1593_v6, %v2628_v49  ;;  %v1700_v44 = vadd.f32 %v1666_v1, %v2630_v50  ;;  %v1595_v54 = vpop.f32.mrb[50].mxu0  ;;  %v1668_v55 = vpop.f32.mrb[50].mxu1 }
 0x246   : > { %1796 = vst [vmem:[%s2646_s19 + $0xc0] sm:$0xff] %v1697_v21  ;;  %1798 = vst [vmem:[%s2646_s19 + $0xd0] sm:$0xff] %v1699_v22  ;;  %v1701_v56 = vadd.f32 %v1595_v54, %v2634_v4  ;;  %v1703_v58 = vadd.f32 %v1668_v55, %v2636_v5  ;;  %v1597_v7 = vpop.f32.mrb[51].mxu0  ;;  %v1670_v59 = vpop.f32.mrb[51].mxu1 }
 0x247   : > { %1797 = vst [vmem:[%s2646_s19 + $0xc8] sm:$0xff] %v1698_v25  ;;  %1799 = vst [vmem:[%s2646_s19 + $0xd8] sm:$0xff] %v1700_v44  ;;  %v1702_v12 = vadd.f32 %v1597_v7, %v2638_v39  ;;  %v1704_v49 = vadd.f32 %v1670_v59, %v2640_v53 }
 0x248   : > { %1800 = vst [vmem:[%s2646_s19 + $0xe0] sm:$0xff] %v1701_v56  ;;  %1802 = vst [vmem:[%s2646_s19 + $0xf0] sm:$0xff] %v1703_v58 }
 0x249   : > { %1801 = vst [vmem:[%s2646_s19 + $0xe8] sm:$0xff] %v1702_v12  ;;  %1803 = vst [vmem:[%s2646_s19 + $0xf8] sm:$0xff] %v1704_v49 }
 0x24a PF: > { %s20_s11 = sadd.s32 1, %s2199_s11   ;;  %s2739_s30 = smov %s2195_s10 }
 0x24b   : > { %p17_p3 = scmp.ge.s32.totalorder %s20_s11, 4   ;;  %s2740_s10 = smov %s2742_s13 }
 0x24d   :  { %19 = sbr.rel (!%p17_p3) target bundleno = 2 (0x2), region = 109 }
 0x254   :  { %1834 = vsyncpa [#allocation4], 1 }
 0x255   :  { %1836 = vsyncpa [#allocation4 + $0x1], 1 }

</bundles_post_ra>
